<compile_context>
chip_gen: v5e
topology: v5e:2x2
jax: 0.10.0
libtpu: 0.0.40
codegen_flags: <defaults>
</compile_context>

<pallas_src>
import jax
import jax.numpy as jnp
from jax.experimental import pallas as pl
from jax.experimental.pallas import tpu as pltpu

# Small synthetic BERT config.
B, S, H, NH, I, V = 2, 8, 32, 2, 64, 64   # sentence pairs, seq, hidden, heads, intermediate, vocab
BB = 2 * B                                # stacked sentences (sent1 rows then sent2 rows)
DH = H // NH
LN_EPS = 1e-12
OUT_LANES = 128                                      # lane-dense output slab width
OUT_ROWS = ((BB + B + 1 + 7) // 8) * 8               # hidden rows + p rows + loss row, padded to 8


def _layernorm(x, g, b):
    mu = jnp.mean(x, axis=-1, keepdims=True)
    var = jnp.mean((x - mu) ** 2, axis=-1, keepdims=True)
    return (x - mu) * jax.lax.rsqrt(var + LN_EPS) * g + b


def fused_pretrain_mtb_kernel(nvalid_ref,   # SMEM (2B,) int32  valid-token counts
                              x_ref,        # VMEM (2B, S, H) f32  word+pos+type embedding sum
                              mask_ref,     # VMEM (2B, S) f32
                              labels_ref,   # VMEM (B, 1) f32
                              wqkv_ref,     # VMEM (H, 3H) bf16  [Q | K | V]
                              bqkv_ref,     # VMEM (1, 3H) f32
                              wo_ref,       # VMEM (H, H) bf16
                              w1_ref,       # VMEM (H, I) bf16
                              b1_ref,       # VMEM (1, I) f32
                              w2_ref,       # VMEM (I, H) bf16
                              vec_ref,      # VMEM (8, H) f32 packed ln/bias vectors
                              out_ref):     # VMEM (OUT_ROWS, 128) f32
    vec = vec_ref[...]
    ln_e_g, ln_e_b, bo = vec[0:1], vec[1:2], vec[2:3]
    ln1_g, ln1_b, b2 = vec[3:4], vec[4:5], vec[5:6]
    ln2_g, ln2_b = vec[6:7], vec[7:8]

    x = x_ref[...]                                    # (BB, S, H) f32
    mask = mask_ref[...]                              # (BB, S)    f32

    # ---- embedding LayerNorm over the full stacked sequence (needed for K / V) ----
    xe = _layernorm(x.reshape(BB * S, H), ln_e_g, ln_e_b)            # (BB*S, H) f32

    # ---- gather the single row per example that is ultimately consumed: idx = nvalid - 2 ----
    rows = []
    for r in range(BB):                               # static gather loop (BB=4); matmuls batched
        idx = jnp.maximum(nvalid_ref[r] - 2, 0)       # clamp guards nvalid < 2
        rows.append(x_ref[r, pl.ds(idx, 1), :])       # (1, H) raw embedding row
    xq = _layernorm(jnp.concatenate(rows, axis=0), ln_e_g, ln_e_b)   # (BB, H) == xe at target pos

    wqkv = wqkv_ref[...]                              # (H, 3H) bf16
    bqkv = bqkv_ref[...]                              # (1, 3H) f32

    # ---- projections: K/V for the whole sequence (fused (H,2H) matmul), Q only for the rows ----
    kv = jnp.dot(xe.astype(jnp.bfloat16), wqkv[:, H:],
                 preferred_element_type=jnp.float32) + bqkv[:, H:]    # (BB*S, 2H) f32
    q = jnp.dot(xq.astype(jnp.bfloat16), wqkv[:, :H],
                preferred_element_type=jnp.float32) + bqkv[:, :H]     # (BB, H) f32
    k_all = kv[:, :H].reshape(BB, S, H)
    v_all = kv[:, H:].reshape(BB, S, H)
    q3 = q[:, None, :]                                # (BB, 1, H)

    neg = ((1.0 - mask) * (-1e9))[:, None, :]         # (BB, 1, S) additive key mask
    scale = 1.0 / (DH ** 0.5)
    wo = wo_ref[...]                                  # (H, H) bf16

    attn = None
    for h in range(NH):                               # static over NH=2 heads, batched over 2B rows
        sl = slice(h * DH, (h + 1) * DH)
        sc = jnp.einsum('bqd,bkd->bqk',
                        q3[:, :, sl].astype(jnp.bfloat16),
                        k_all[:, :, sl].astype(jnp.bfloat16),
                        preferred_element_type=jnp.float32) * scale + neg     # (BB, 1, S)
        pw = jax.nn.softmax(sc, axis=-1)              # f32 (EUP exp input stays f32)
        ctx = jnp.einsum('bqk,bkd->bqd',
                         pw.astype(jnp.bfloat16),
                         v_all[:, :, sl].astype(jnp.bfloat16),
                         preferred_element_type=jnp.float32)[:, 0, :]         # (BB, DH)
        part = jnp.dot(ctx.astype(jnp.bfloat16), wo[sl, :],
                       preferred_element_type=jnp.float32)                    # (BB, H)
        attn = part if attn is None else attn + part
    attn = attn + bo

    h1 = _layernorm(attn + xq, ln1_g, ln1_b)          # (BB, H)

    # ---- FFN + residual LayerNorm on the single extracted row per example ----
    ff = jax.nn.gelu(jnp.dot(h1.astype(jnp.bfloat16), w1_ref[...],
                             preferred_element_type=jnp.float32) + b1_ref[...],
                     approximate=True)                # TODO(synk): HF BERT uses exact erf gelu
    ffo = jnp.dot(ff.astype(jnp.bfloat16), w2_ref[...],
                  preferred_element_type=jnp.float32) + b2
    hrows = _layernorm(ffo + h1, ln2_g, ln2_b)        # (BB, H) = hidden_states[1] at [-2]-valid pos

    # ---- cosine head: p = 0.5 + 0.5 * cos(sent1_hidden, sent2_hidden)  (torch eps = 1e-8) ----
    ha, hb = hrows[:B, :], hrows[B:, :]
    dots = jnp.sum(ha * hb, axis=-1, keepdims=True)
    na = jnp.sqrt(jnp.sum(ha * ha, axis=-1, keepdims=True))
    nb = jnp.sqrt(jnp.sum(hb * hb, axis=-1, keepdims=True))
    p = 0.5 + 0.5 * dots / (jnp.maximum(na, 1e-8) * jnp.maximum(nb, 1e-8))    # (B, 1)

    # ---- MTBLoss: -(sum(labels*log(p+1e-6) + (1-labels)*log(1-p+1e-6))) / B ----
    lab = labels_ref[...]                             # (B, 1) f32
    ll = lab * jnp.log(p + 1e-6) + (1.0 - lab) * jnp.log(1.0 - p + 1e-6)
    loss = -jnp.sum(ll) / float(B)

    # ---- single lane-dense (OUT_ROWS, 128) output slab: one unmasked full-vreg store ----
    hid_pad = jnp.concatenate(
        [hrows, jnp.zeros((BB, OUT_LANES - H), jnp.float32)], axis=-1)        # (BB, 128)
    p_rows = jnp.broadcast_to(p, (B, OUT_LANES))                              # (B, 128)
    loss_row = jnp.broadcast_to(loss.reshape(1, 1), (1, OUT_LANES))           # (1, 128)
    pieces = [hid_pad, p_rows, loss_row]
    pad_rows = OUT_ROWS - (BB + B + 1)
    if pad_rows > 0:
        pieces.append(jnp.zeros((pad_rows, OUT_LANES), jnp.float32))
    out_ref[...] = jnp.concatenate(pieces, axis=0)


def init_params(key):
    ks = jax.random.split(key, 12)

    def dense(k, shape, dtype=jnp.bfloat16):
        return (0.02 * jax.random.normal(k, shape)).astype(dtype)

    vec_h = jnp.concatenate([
        jnp.ones((1, H), jnp.float32),                 # ln_e_g
        jnp.zeros((1, H), jnp.float32),                # ln_e_b
        dense(ks[7], (1, H), jnp.float32),             # bo
        jnp.ones((1, H), jnp.float32),                 # ln1_g
        jnp.zeros((1, H), jnp.float32),                # ln1_b
        dense(ks[8], (1, H), jnp.float32),             # b2
        jnp.ones((1, H), jnp.float32),                 # ln2_g
        jnp.zeros((1, H), jnp.float32),                # ln2_b
    ], axis=0)                                         # (8, H) f32
    return dict(
        word_emb=dense(ks[0], (V, H), jnp.float32),
        pos_emb=dense(ks[1], (S, H), jnp.float32),
        type_emb=dense(ks[2], (2, H), jnp.float32),
        wqkv=dense(ks[3], (H, 3 * H)),                 # bf16, [Q | K | V] fused
        wo=dense(ks[4], (H, H)),                       # bf16
        w1=dense(ks[5], (H, I)),                       # bf16
        w2=dense(ks[6], (I, H)),                       # bf16
        bqkv=dense(ks[9], (1, 3 * H), jnp.float32),
        b1=dense(ks[10], (1, I), jnp.float32),
        vec_h=vec_h,
    )


@jax.jit
def mtb_pretrain_forward(ids1, mask1, ids2, mask2, labels, params):
    """Returns (sent1_hidden (B,H), sent2_hidden (B,H), p (B,), MTB loss ())."""
    ids = jnp.concatenate([ids1, ids2], axis=0)                        # (2B, S)
    masks_i = jnp.concatenate([mask1, mask2], axis=0)                  # (2B, S) int
    # embedding lookup glue (gather): word + position + token-type(0) embeddings
    x_emb = (params["word_emb"][ids]
             + params["pos_emb"][None, :, :]
             + params["type_emb"][0][None, None, :]).astype(jnp.float32)
    masks_f = masks_i.astype(jnp.float32)
    nvalid = jnp.sum(masks_i, axis=-1).astype(jnp.int32)               # (2B,)
    labels2d = labels.astype(jnp.float32).reshape(B, 1)

    vmem = pl.BlockSpec(memory_space=pltpu.MemorySpace.VMEM)
    smem = pl.BlockSpec(memory_space=pltpu.MemorySpace.SMEM)
    out = pl.pallas_call(
        fused_pretrain_mtb_kernel,
        out_shape=jax.ShapeDtypeStruct((OUT_ROWS, OUT_LANES), jnp.float32),
        in_specs=[smem] + [vmem] * 10,
        out_specs=vmem,
    )(nvalid, x_emb, masks_f, labels2d,
      params["wqkv"], params["bqkv"], params["wo"],
      params["w1"], params["b1"], params["w2"], params["vec_h"])

    h1 = out[:B, :H]
    h2 = out[B:BB, :H]
    p = out[BB:BB + B, 0]
    loss = out[BB + B, 0]
    return h1, h2, p, loss


def reference_forward(ids1, mask1, ids2, mask2, labels, params):
    """Pure-JAX reference: full-sequence encoder layer, then row extraction, cosine, MTBLoss."""
    ids = jnp.concatenate([ids1, ids2], axis=0)
    masks = jnp.concatenate([mask1, mask2], axis=0).astype(jnp.float32)
    x = (params["word_emb"][ids] + params["pos_emb"][None, :, :]
         + params["type_emb"][0][None, None, :]).astype(jnp.float32)
    vec = params["vec_h"]
    ln_e_g, ln_e_b, bo = vec[0:1], vec[1:2], vec[2:3]
    ln1_g, ln1_b, b2 = vec[3:4], vec[4:5], vec[5:6]
    ln2_g, ln2_b = vec[6:7], vec[7:8]
    bf = jnp.bfloat16

    xe = _layernorm(x, ln_e_g, ln_e_b)                                  # (BB, S, H)
    qkv = jnp.einsum('bsh,hk->bsk', xe.astype(bf), params["wqkv"],
                     preferred_element_type=jnp.float32) + params["bqkv"][0]
    q, k, v = qkv[..., :H], qkv[..., H:2 * H], qkv[..., 2 * H:]
    qh = q.reshape(BB, S, NH, DH)
    kh = k.reshape(BB, S, NH, DH)
    vh = v.reshape(BB, S, NH, DH)
    neg = ((1.0 - masks) * (-1e9))[:, None, None, :]                    # (BB,1,1,S)
    sc = jnp.einsum('bqnd,bknd->bnqk', qh.astype(bf), kh.astype(bf),
                    preferred_element_type=jnp.float32) * (1.0 / (DH ** 0.5)) + neg
    pw = jax.nn.softmax(sc, axis=-1)
    ctx = jnp.einsum('bnqk,bknd->bqnd', pw.astype(bf), vh.astype(bf),
                     preferred_element_type=jnp.float32).reshape(BB, S, H)
    attn = jnp.einsum('bsh,hk->bsk', ctx.astype(bf), params["wo"],
                      preferred_element_type=jnp.float32) + bo
    h1 = _layernorm(attn + xe, ln1_g, ln1_b)
    ff = jax.nn.gelu(jnp.einsum('bsh,hi->bsi', h1.astype(bf), params["w1"],
                                preferred_element_type=jnp.float32) + params["b1"][0],
                     approximate=True)
    ffo = jnp.einsum('bsi,ih->bsh', ff.astype(bf), params["w2"],
                     preferred_element_type=jnp.float32) + b2
    hid = _layernorm(ffo + h1, ln2_g, ln2_b)                             # hidden_states[1]

    idx = jnp.maximum(jnp.sum(masks, axis=-1).astype(jnp.int32) - 2, 0)
    rows = jnp.take_along_axis(hid, idx[:, None, None], axis=1)[:, 0, :]  # (BB, H)
    ha, hb = rows[:B], rows[B:]
    dots = jnp.sum(ha * hb, axis=-1)
    na = jnp.sqrt(jnp.sum(ha * ha, axis=-1))
    nb = jnp.sqrt(jnp.sum(hb * hb, axis=-1))
    p = 0.5 + 0.5 * dots / (jnp.maximum(na, 1e-8) * jnp.maximum(nb, 1e-8))
    lab = labels.astype(jnp.float32)
    loss = -jnp.sum(lab * jnp.log(p + 1e-6) + (1.0 - lab) * jnp.log(1.0 - p + 1e-6)) / B
    return ha, hb, p, loss


if __name__ == "__main__":
    key = jax.random.PRNGKey(0)
    kp, k1, k2, kl = jax.random.split(key, 4)
    params = init_params(kp)

    # synthetic "already tokenized" prompt sentences (tokenizer has no Pallas equivalent)
    ids1 = jax.random.randint(k1, (B, S), 0, V, dtype=jnp.int32)
    ids2 = jax.random.randint(k2, (B, S), 0, V, dtype=jnp.int32)
    # right-padded attention masks (each example has >= 2 valid tokens)
    mask1 = jnp.array([[1, 1, 1, 1, 1, 1, 1, 1],
                       [1, 1, 1, 1, 1, 1, 0, 0]], dtype=jnp.int32)
    mask2 = jnp.array([[1, 1, 1, 1, 1, 0, 0, 0],
                       [1, 1, 1, 1, 1, 1, 1, 0]], dtype=jnp.int32)
    labels = jax.random.bernoulli(kl, 0.5, (B,)).astype(jnp.float32)

    h1, h2, p, loss = mtb_pretrain_forward(ids1, mask1, ids2, mask2, labels, params)
    jax.block_until_ready((h1, h2, p, loss))

    assert h1.shape == (B, H) and h2.shape == (B, H) and p.shape == (B,) and loss.shape == ()
    assert bool(jnp.all(jnp.isfinite(h1))) and bool(jnp.all(jnp.isfinite(h2)))
    assert bool(jnp.all(jnp.isfinite(p))) and bool(jnp.isfinite(loss))

    # MTBLoss semantics check: apply the module's exact formula to the kernel's own outputs.
    mtb_ref = -jnp.sum(labels * jnp.log(p + 1e-6)
                       + (1.0 - labels) * jnp.log(1.0 - p + 1e-6)) / h1.shape[0]
    assert bool(jnp.allclose(loss, mtb_ref, rtol=1e-4, atol=1e-4))

    # end-to-end check against the pure-JAX full-sequence reference
    rh1, rh2, rp, rloss = reference_forward(ids1, mask1, ids2, mask2, labels, params)
    assert bool(jnp.allclose(h1, rh1, rtol=2e-2, atol=2e-2))
    assert bool(jnp.allclose(h2, rh2, rtol=2e-2, atol=2e-2))
    assert bool(jnp.allclose(p, rp, rtol=2e-2, atol=2e-2))
    assert bool(jnp.allclose(loss, rloss, rtol=5e-2, atol=5e-2))

    print("KERNEL_OK")
</pallas_src>

<mosaic_0001>
module attributes {stable_mosaic.version = 11 : i64} {
  func.func @fused_pretrain_mtb_kernel(%arg0: memref<4xi32, #tpu.memory_space<smem>>, %arg1: memref<4x8x32xf32, #tpu.memory_space<vmem>>, %arg2: memref<4x8xf32, #tpu.memory_space<vmem>>, %arg3: memref<2x1xf32, #tpu.memory_space<vmem>>, %arg4: memref<32x96xbf16, #tpu.memory_space<vmem>>, %arg5: memref<1x96xf32, #tpu.memory_space<vmem>>, %arg6: memref<32x32xbf16, #tpu.memory_space<vmem>>, %arg7: memref<32x64xbf16, #tpu.memory_space<vmem>>, %arg8: memref<1x64xf32, #tpu.memory_space<vmem>>, %arg9: memref<64x32xbf16, #tpu.memory_space<vmem>>, %arg10: memref<8x32xf32, #tpu.memory_space<vmem>>, %arg11: memref<8x128xf32, #tpu.memory_space<vmem>>) attributes {dimension_semantics = [], scalar_prefetch = 0 : i64, scratch_operands = 0 : i64, tpu.core_type = #tpu.core_type<tc>} {
    %c0 = arith.constant 0 : index
    %c0_0 = arith.constant 0 : index
    %0 = vector.load %arg10[%c0, %c0_0] : memref<8x32xf32, #tpu.memory_space<vmem>>, vector<8x32xf32>
    %1 = vector.extract_strided_slice %0 {offsets = [0, 0], sizes = [1, 32], strides = [1, 1]} : vector<8x32xf32> to vector<1x32xf32>
    %2 = vector.extract_strided_slice %0 {offsets = [1, 0], sizes = [1, 32], strides = [1, 1]} : vector<8x32xf32> to vector<1x32xf32>
    %3 = vector.extract_strided_slice %0 {offsets = [2, 0], sizes = [1, 32], strides = [1, 1]} : vector<8x32xf32> to vector<1x32xf32>
    %4 = vector.extract_strided_slice %0 {offsets = [3, 0], sizes = [1, 32], strides = [1, 1]} : vector<8x32xf32> to vector<1x32xf32>
    %5 = vector.extract_strided_slice %0 {offsets = [4, 0], sizes = [1, 32], strides = [1, 1]} : vector<8x32xf32> to vector<1x32xf32>
    %6 = vector.extract_strided_slice %0 {offsets = [5, 0], sizes = [1, 32], strides = [1, 1]} : vector<8x32xf32> to vector<1x32xf32>
    %7 = vector.extract_strided_slice %0 {offsets = [6, 0], sizes = [1, 32], strides = [1, 1]} : vector<8x32xf32> to vector<1x32xf32>
    %8 = vector.extract_strided_slice %0 {offsets = [7, 0], sizes = [1, 32], strides = [1, 1]} : vector<8x32xf32> to vector<1x32xf32>
    %c0_1 = arith.constant 0 : index
    %c0_2 = arith.constant 0 : index
    %c0_3 = arith.constant 0 : index
    %9 = vector.load %arg1[%c0_1, %c0_2, %c0_3] : memref<4x8x32xf32, #tpu.memory_space<vmem>>, vector<4x8x32xf32>
    %c0_4 = arith.constant 0 : index
    %c0_5 = arith.constant 0 : index
    %10 = vector.load %arg2[%c0_4, %c0_5] : memref<4x8xf32, #tpu.memory_space<vmem>>, vector<4x8xf32>
    %11 = vector.shape_cast %9 : vector<4x8x32xf32> to vector<32x32xf32>
    %cst = arith.constant dense<0.000000e+00> : vector<32xf32>
    %12 = vector.multi_reduction <add>, %11, %cst [1] : vector<32x32xf32> to vector<32xf32>
    %13 = vector.shape_cast %12 : vector<32xf32> to vector<32x1xf32>
    %cst_6 = arith.constant 3.200000e+01 : f32
    %14 = vector.broadcast %cst_6 : f32 to vector<32x1xf32>
    %15 = arith.divf %13, %14 : vector<32x1xf32>
    %16 = vector.broadcast %15 : vector<32x1xf32> to vector<32x32xf32>
    %17 = arith.subf %11, %16 : vector<32x32xf32>
    %18 = arith.mulf %17, %17 : vector<32x32xf32>
    %cst_7 = arith.constant dense<0.000000e+00> : vector<32xf32>
    %19 = vector.multi_reduction <add>, %18, %cst_7 [1] : vector<32x32xf32> to vector<32xf32>
    %20 = vector.shape_cast %19 : vector<32xf32> to vector<32x1xf32>
    %cst_8 = arith.constant 3.200000e+01 : f32
    %21 = vector.broadcast %cst_8 : f32 to vector<32x1xf32>
    %22 = arith.divf %20, %21 : vector<32x1xf32>
    %23 = vector.broadcast %15 : vector<32x1xf32> to vector<32x32xf32>
    %24 = arith.subf %11, %23 : vector<32x32xf32>
    %cst_9 = arith.constant 9.99999996E-13 : f32
    %25 = vector.broadcast %cst_9 : f32 to vector<32x1xf32>
    %26 = arith.addf %22, %25 : vector<32x1xf32>
    %27 = math.rsqrt %26 : vector<32x1xf32>
    %28 = vector.broadcast %27 : vector<32x1xf32> to vector<32x32xf32>
    %29 = arith.mulf %24, %28 : vector<32x32xf32>
    %30 = vector.broadcast %1 : vector<1x32xf32> to vector<32x32xf32>
    %31 = arith.mulf %29, %30 : vector<32x32xf32>
    %32 = vector.broadcast %2 : vector<1x32xf32> to vector<32x32xf32>
    %33 = arith.addf %31, %32 : vector<32x32xf32>
    %c0_10 = arith.constant 0 : index
    %34 = memref.load %arg0[%c0_10] : memref<4xi32, #tpu.memory_space<smem>>
    %c2_i32 = arith.constant 2 : i32
    %35 = arith.subi %34, %c2_i32 : i32
    %c0_i32 = arith.constant 0 : i32
    %36 = arith.maxsi %35, %c0_i32 : i32
    %c0_11 = arith.constant 0 : index
    %37 = arith.index_cast %36 : i32 to index
    %c0_12 = arith.constant 0 : index
    %38 = vector.load %arg1[%c0_11, %37, %c0_12] : memref<4x8x32xf32, #tpu.memory_space<vmem>>, vector<1x1x32xf32>
    %39 = vector.shape_cast %38 : vector<1x1x32xf32> to vector<1x32xf32>
    %c1 = arith.constant 1 : index
    %40 = memref.load %arg0[%c1] : memref<4xi32, #tpu.memory_space<smem>>
    %c2_i32_13 = arith.constant 2 : i32
    %41 = arith.subi %40, %c2_i32_13 : i32
    %c0_i32_14 = arith.constant 0 : i32
    %42 = arith.maxsi %41, %c0_i32_14 : i32
    %c1_15 = arith.constant 1 : index
    %43 = arith.index_cast %42 : i32 to index
    %c0_16 = arith.constant 0 : index
    %44 = vector.load %arg1[%c1_15, %43, %c0_16] : memref<4x8x32xf32, #tpu.memory_space<vmem>>, vector<1x1x32xf32>
    %45 = vector.shape_cast %44 : vector<1x1x32xf32> to vector<1x32xf32>
    %c2 = arith.constant 2 : index
    %46 = memref.load %arg0[%c2] : memref<4xi32, #tpu.memory_space<smem>>
    %c2_i32_17 = arith.constant 2 : i32
    %47 = arith.subi %46, %c2_i32_17 : i32
    %c0_i32_18 = arith.constant 0 : i32
    %48 = arith.maxsi %47, %c0_i32_18 : i32
    %c2_19 = arith.constant 2 : index
    %49 = arith.index_cast %48 : i32 to index
    %c0_20 = arith.constant 0 : index
    %50 = vector.load %arg1[%c2_19, %49, %c0_20] : memref<4x8x32xf32, #tpu.memory_space<vmem>>, vector<1x1x32xf32>
    %51 = vector.shape_cast %50 : vector<1x1x32xf32> to vector<1x32xf32>
    %c3 = arith.constant 3 : index
    %52 = memref.load %arg0[%c3] : memref<4xi32, #tpu.memory_space<smem>>
    %c2_i32_21 = arith.constant 2 : i32
    %53 = arith.subi %52, %c2_i32_21 : i32
    %c0_i32_22 = arith.constant 0 : i32
    %54 = arith.maxsi %53, %c0_i32_22 : i32
    %c3_23 = arith.constant 3 : index
    %55 = arith.index_cast %54 : i32 to index
    %c0_24 = arith.constant 0 : index
    %56 = vector.load %arg1[%c3_23, %55, %c0_24] : memref<4x8x32xf32, #tpu.memory_space<vmem>>, vector<1x1x32xf32>
    %57 = vector.shape_cast %56 : vector<1x1x32xf32> to vector<1x32xf32>
    %58 = tpu.concatenate %39, %45, %51, %57 in 0 : vector<1x32xf32>, vector<1x32xf32>, vector<1x32xf32>, vector<1x32xf32> -> vector<4x32xf32>
    %cst_25 = arith.constant dense<0.000000e+00> : vector<4xf32>
    %59 = vector.multi_reduction <add>, %58, %cst_25 [1] : vector<4x32xf32> to vector<4xf32>
    %60 = vector.shape_cast %59 : vector<4xf32> to vector<4x1xf32>
    %cst_26 = arith.constant 3.200000e+01 : f32
    %61 = vector.broadcast %cst_26 : f32 to vector<4x1xf32>
    %62 = arith.divf %60, %61 : vector<4x1xf32>
    %63 = vector.broadcast %62 : vector<4x1xf32> to vector<4x32xf32>
    %64 = arith.subf %58, %63 : vector<4x32xf32>
    %65 = arith.mulf %64, %64 : vector<4x32xf32>
    %cst_27 = arith.constant dense<0.000000e+00> : vector<4xf32>
    %66 = vector.multi_reduction <add>, %65, %cst_27 [1] : vector<4x32xf32> to vector<4xf32>
    %67 = vector.shape_cast %66 : vector<4xf32> to vector<4x1xf32>
    %cst_28 = arith.constant 3.200000e+01 : f32
    %68 = vector.broadcast %cst_28 : f32 to vector<4x1xf32>
    %69 = arith.divf %67, %68 : vector<4x1xf32>
    %70 = vector.broadcast %62 : vector<4x1xf32> to vector<4x32xf32>
    %71 = arith.subf %58, %70 : vector<4x32xf32>
    %cst_29 = arith.constant 9.99999996E-13 : f32
    %72 = vector.broadcast %cst_29 : f32 to vector<4x1xf32>
    %73 = arith.addf %69, %72 : vector<4x1xf32>
    %74 = math.rsqrt %73 : vector<4x1xf32>
    %75 = vector.broadcast %74 : vector<4x1xf32> to vector<4x32xf32>
    %76 = arith.mulf %71, %75 : vector<4x32xf32>
    %77 = vector.broadcast %1 : vector<1x32xf32> to vector<4x32xf32>
    %78 = arith.mulf %76, %77 : vector<4x32xf32>
    %79 = vector.broadcast %2 : vector<1x32xf32> to vector<4x32xf32>
    %80 = arith.addf %78, %79 : vector<4x32xf32>
    %c0_30 = arith.constant 0 : index
    %c0_31 = arith.constant 0 : index
    %81 = vector.load %arg4[%c0_30, %c0_31] : memref<32x96xbf16, #tpu.memory_space<vmem>>, vector<32x96xbf16>
    %c0_32 = arith.constant 0 : index
    %c0_33 = arith.constant 0 : index
    %82 = vector.load %arg5[%c0_32, %c0_33] : memref<1x96xf32, #tpu.memory_space<vmem>>, vector<1x96xf32>
    %83 = arith.truncf %33 : vector<32x32xf32> to vector<32x32xbf16>
    %84 = vector.extract_strided_slice %81 {offsets = [0, 32], sizes = [32, 64], strides = [1, 1]} : vector<32x96xbf16> to vector<32x64xbf16>
    %cst_34 = arith.constant dense<0.000000e+00> : vector<32x64xf32>
    %85 = tpu.matmul %83, %84, %cst_34 {dimension_numbers = #tpu.dot_dimension_numbers<[1], [0], [0], [1], [0, 0, 1, 1], [], []>} : vector<32x32xbf16>, vector<32x64xbf16>, vector<32x64xf32> -> vector<32x64xf32>
    %86 = vector.extract_strided_slice %82 {offsets = [0, 32], sizes = [1, 64], strides = [1, 1]} : vector<1x96xf32> to vector<1x64xf32>
    %87 = vector.broadcast %86 : vector<1x64xf32> to vector<32x64xf32>
    %88 = arith.addf %85, %87 : vector<32x64xf32>
    %89 = arith.truncf %80 : vector<4x32xf32> to vector<4x32xbf16>
    %90 = vector.extract_strided_slice %81 {offsets = [0, 0], sizes = [32, 32], strides = [1, 1]} : vector<32x96xbf16> to vector<32x32xbf16>
    %cst_35 = arith.constant dense<0.000000e+00> : vector<4x32xf32>
    %91 = tpu.matmul %89, %90, %cst_35 {dimension_numbers = #tpu.dot_dimension_numbers<[1], [0], [0], [1], [0, 0, 1, 1], [], []>} : vector<4x32xbf16>, vector<32x32xbf16>, vector<4x32xf32> -> vector<4x32xf32>
    %92 = vector.extract_strided_slice %82 {offsets = [0, 0], sizes = [1, 32], strides = [1, 1]} : vector<1x96xf32> to vector<1x32xf32>
    %93 = vector.broadcast %92 : vector<1x32xf32> to vector<4x32xf32>
    %94 = arith.addf %91, %93 : vector<4x32xf32>
    %95 = vector.extract_strided_slice %88 {offsets = [0, 0], sizes = [32, 32], strides = [1, 1]} : vector<32x64xf32> to vector<32x32xf32>
    %96 = vector.shape_cast %95 : vector<32x32xf32> to vector<4x8x32xf32>
    %97 = vector.extract_strided_slice %88 {offsets = [0, 32], sizes = [32, 32], strides = [1, 1]} : vector<32x64xf32> to vector<32x32xf32>
    %98 = vector.shape_cast %97 : vector<32x32xf32> to vector<4x8x32xf32>
    %99 = vector.shape_cast %94 : vector<4x32xf32> to vector<4x1x32xf32>
    %cst_36 = arith.constant 1.000000e+00 : f32
    %100 = vector.broadcast %cst_36 : f32 to vector<4x8xf32>
    %101 = arith.subf %100, %10 : vector<4x8xf32>
    %cst_37 = arith.constant -1.000000e+09 : f32
    %102 = vector.broadcast %cst_37 : f32 to vector<4x8xf32>
    %103 = arith.mulf %101, %102 : vector<4x8xf32>
    %104 = vector.shape_cast %103 : vector<4x8xf32> to vector<4x1x8xf32>
    %c0_38 = arith.constant 0 : index
    %c0_39 = arith.constant 0 : index
    %105 = vector.load %arg6[%c0_38, %c0_39] : memref<32x32xbf16, #tpu.memory_space<vmem>>, vector<32x32xbf16>
    %106 = vector.extract_strided_slice %99 {offsets = [0, 0, 0], sizes = [4, 1, 16], strides = [1, 1, 1]} : vector<4x1x32xf32> to vector<4x1x16xf32>
    %107 = arith.truncf %106 : vector<4x1x16xf32> to vector<4x1x16xbf16>
    %108 = vector.extract_strided_slice %96 {offsets = [0, 0, 0], sizes = [4, 8, 16], strides = [1, 1, 1]} : vector<4x8x32xf32> to vector<4x8x16xf32>
    %109 = arith.truncf %108 : vector<4x8x16xf32> to vector<4x8x16xbf16>
    "tpu.trace_start"() <{level = 10 : i32, message = "bqd,bkd->bqk"}> : () -> ()
    %cst_40 = arith.constant dense<0.000000e+00> : vector<4x1x8xf32>
    %110 = tpu.matmul %107, %109, %cst_40 {dimension_numbers = #tpu.dot_dimension_numbers<[2], [2], [1], [1], [0, 0, 0, 1, 1, 1], [0], [0]>} : vector<4x1x16xbf16>, vector<4x8x16xbf16>, vector<4x1x8xf32> -> vector<4x1x8xf32>
    "tpu.trace_stop"() : () -> ()
    %cst_41 = arith.constant 2.500000e-01 : f32
    %111 = vector.broadcast %cst_41 : f32 to vector<4x1x8xf32>
    %112 = arith.mulf %110, %111 : vector<4x1x8xf32>
    %113 = arith.addf %112, %104 : vector<4x1x8xf32>
    %cst_42 = arith.constant dense<0xFF800000> : vector<4x1xf32>
    %114 = vector.multi_reduction <maximumf>, %113, %cst_42 [2] : vector<4x1x8xf32> to vector<4x1xf32>
    %cst_43 = arith.constant 0xFF800000 : f32
    %115 = vector.broadcast %cst_43 : f32 to vector<4x1xf32>
    %116 = arith.maximumf %115, %114 : vector<4x1xf32>
    %117 = vector.shape_cast %116 : vector<4x1xf32> to vector<4x1x1xf32>
    %118 = vector.broadcast %117 : vector<4x1x1xf32> to vector<4x1x8xf32>
    %119 = arith.subf %113, %118 : vector<4x1x8xf32>
    %120 = math.exp %119 : vector<4x1x8xf32>
    %cst_44 = arith.constant dense<0.000000e+00> : vector<4x1xf32>
    %121 = vector.multi_reduction <add>, %120, %cst_44 [2] : vector<4x1x8xf32> to vector<4x1xf32>
    %122 = vector.shape_cast %121 : vector<4x1xf32> to vector<4x1x1xf32>
    %123 = vector.broadcast %122 : vector<4x1x1xf32> to vector<4x1x8xf32>
    %124 = arith.divf %120, %123 : vector<4x1x8xf32>
    %125 = arith.truncf %124 : vector<4x1x8xf32> to vector<4x1x8xbf16>
    %126 = vector.extract_strided_slice %98 {offsets = [0, 0, 0], sizes = [4, 8, 16], strides = [1, 1, 1]} : vector<4x8x32xf32> to vector<4x8x16xf32>
    %127 = arith.truncf %126 : vector<4x8x16xf32> to vector<4x8x16xbf16>
    "tpu.trace_start"() <{level = 10 : i32, message = "bqk,bkd->bqd"}> : () -> ()
    %cst_45 = arith.constant dense<0.000000e+00> : vector<4x1x16xf32>
    %128 = tpu.matmul %125, %127, %cst_45 {dimension_numbers = #tpu.dot_dimension_numbers<[2], [1], [1], [2], [0, 0, 0, 1, 1, 2], [0], [0]>} : vector<4x1x8xbf16>, vector<4x8x16xbf16>, vector<4x1x16xf32> -> vector<4x1x16xf32>
    "tpu.trace_stop"() : () -> ()
    %129 = vector.shape_cast %128 : vector<4x1x16xf32> to vector<4x16xf32>
    %130 = arith.truncf %129 : vector<4x16xf32> to vector<4x16xbf16>
    %131 = vector.extract_strided_slice %105 {offsets = [0, 0], sizes = [16, 32], strides = [1, 1]} : vector<32x32xbf16> to vector<16x32xbf16>
    %cst_46 = arith.constant dense<0.000000e+00> : vector<4x32xf32>
    %132 = tpu.matmul %130, %131, %cst_46 {dimension_numbers = #tpu.dot_dimension_numbers<[1], [0], [0], [1], [0, 0, 1, 1], [], []>} : vector<4x16xbf16>, vector<16x32xbf16>, vector<4x32xf32> -> vector<4x32xf32>
    %133 = vector.extract_strided_slice %99 {offsets = [0, 0, 16], sizes = [4, 1, 16], strides = [1, 1, 1]} : vector<4x1x32xf32> to vector<4x1x16xf32>
    %134 = arith.truncf %133 : vector<4x1x16xf32> to vector<4x1x16xbf16>
    %135 = vector.extract_strided_slice %96 {offsets = [0, 0, 16], sizes = [4, 8, 16], strides = [1, 1, 1]} : vector<4x8x32xf32> to vector<4x8x16xf32>
    %136 = arith.truncf %135 : vector<4x8x16xf32> to vector<4x8x16xbf16>
    "tpu.trace_start"() <{level = 10 : i32, message = "bqd,bkd->bqk"}> : () -> ()
    %cst_47 = arith.constant dense<0.000000e+00> : vector<4x1x8xf32>
    %137 = tpu.matmul %134, %136, %cst_47 {dimension_numbers = #tpu.dot_dimension_numbers<[2], [2], [1], [1], [0, 0, 0, 1, 1, 1], [0], [0]>} : vector<4x1x16xbf16>, vector<4x8x16xbf16>, vector<4x1x8xf32> -> vector<4x1x8xf32>
    "tpu.trace_stop"() : () -> ()
    %cst_48 = arith.constant 2.500000e-01 : f32
    %138 = vector.broadcast %cst_48 : f32 to vector<4x1x8xf32>
    %139 = arith.mulf %137, %138 : vector<4x1x8xf32>
    %140 = arith.addf %139, %104 : vector<4x1x8xf32>
    %cst_49 = arith.constant dense<0xFF800000> : vector<4x1xf32>
    %141 = vector.multi_reduction <maximumf>, %140, %cst_49 [2] : vector<4x1x8xf32> to vector<4x1xf32>
    %cst_50 = arith.constant 0xFF800000 : f32
    %142 = vector.broadcast %cst_50 : f32 to vector<4x1xf32>
    %143 = arith.maximumf %142, %141 : vector<4x1xf32>
    %144 = vector.shape_cast %143 : vector<4x1xf32> to vector<4x1x1xf32>
    %145 = vector.broadcast %144 : vector<4x1x1xf32> to vector<4x1x8xf32>
    %146 = arith.subf %140, %145 : vector<4x1x8xf32>
    %147 = math.exp %146 : vector<4x1x8xf32>
    %cst_51 = arith.constant dense<0.000000e+00> : vector<4x1xf32>
    %148 = vector.multi_reduction <add>, %147, %cst_51 [2] : vector<4x1x8xf32> to vector<4x1xf32>
    %149 = vector.shape_cast %148 : vector<4x1xf32> to vector<4x1x1xf32>
    %150 = vector.broadcast %149 : vector<4x1x1xf32> to vector<4x1x8xf32>
    %151 = arith.divf %147, %150 : vector<4x1x8xf32>
    %152 = arith.truncf %151 : vector<4x1x8xf32> to vector<4x1x8xbf16>
    %153 = vector.extract_strided_slice %98 {offsets = [0, 0, 16], sizes = [4, 8, 16], strides = [1, 1, 1]} : vector<4x8x32xf32> to vector<4x8x16xf32>
    %154 = arith.truncf %153 : vector<4x8x16xf32> to vector<4x8x16xbf16>
    "tpu.trace_start"() <{level = 10 : i32, message = "bqk,bkd->bqd"}> : () -> ()
    %cst_52 = arith.constant dense<0.000000e+00> : vector<4x1x16xf32>
    %155 = tpu.matmul %152, %154, %cst_52 {dimension_numbers = #tpu.dot_dimension_numbers<[2], [1], [1], [2], [0, 0, 0, 1, 1, 2], [0], [0]>} : vector<4x1x8xbf16>, vector<4x8x16xbf16>, vector<4x1x16xf32> -> vector<4x1x16xf32>
    "tpu.trace_stop"() : () -> ()
    %156 = vector.shape_cast %155 : vector<4x1x16xf32> to vector<4x16xf32>
    %157 = arith.truncf %156 : vector<4x16xf32> to vector<4x16xbf16>
    %158 = vector.extract_strided_slice %105 {offsets = [16, 0], sizes = [16, 32], strides = [1, 1]} : vector<32x32xbf16> to vector<16x32xbf16>
    %cst_53 = arith.constant dense<0.000000e+00> : vector<4x32xf32>
    %159 = tpu.matmul %157, %158, %cst_53 {dimension_numbers = #tpu.dot_dimension_numbers<[1], [0], [0], [1], [0, 0, 1, 1], [], []>} : vector<4x16xbf16>, vector<16x32xbf16>, vector<4x32xf32> -> vector<4x32xf32>
    %160 = arith.addf %132, %159 : vector<4x32xf32>
    %161 = vector.broadcast %3 : vector<1x32xf32> to vector<4x32xf32>
    %162 = arith.addf %160, %161 : vector<4x32xf32>
    %163 = arith.addf %162, %80 : vector<4x32xf32>
    %cst_54 = arith.constant dense<0.000000e+00> : vector<4xf32>
    %164 = vector.multi_reduction <add>, %163, %cst_54 [1] : vector<4x32xf32> to vector<4xf32>
    %165 = vector.shape_cast %164 : vector<4xf32> to vector<4x1xf32>
    %cst_55 = arith.constant 3.200000e+01 : f32
    %166 = vector.broadcast %cst_55 : f32 to vector<4x1xf32>
    %167 = arith.divf %165, %166 : vector<4x1xf32>
    %168 = vector.broadcast %167 : vector<4x1xf32> to vector<4x32xf32>
    %169 = arith.subf %163, %168 : vector<4x32xf32>
    %170 = arith.mulf %169, %169 : vector<4x32xf32>
    %cst_56 = arith.constant dense<0.000000e+00> : vector<4xf32>
    %171 = vector.multi_reduction <add>, %170, %cst_56 [1] : vector<4x32xf32> to vector<4xf32>
    %172 = vector.shape_cast %171 : vector<4xf32> to vector<4x1xf32>
    %cst_57 = arith.constant 3.200000e+01 : f32
    %173 = vector.broadcast %cst_57 : f32 to vector<4x1xf32>
    %174 = arith.divf %172, %173 : vector<4x1xf32>
    %175 = vector.broadcast %167 : vector<4x1xf32> to vector<4x32xf32>
    %176 = arith.subf %163, %175 : vector<4x32xf32>
    %cst_58 = arith.constant 9.99999996E-13 : f32
    %177 = vector.broadcast %cst_58 : f32 to vector<4x1xf32>
    %178 = arith.addf %174, %177 : vector<4x1xf32>
    %179 = math.rsqrt %178 : vector<4x1xf32>
    %180 = vector.broadcast %179 : vector<4x1xf32> to vector<4x32xf32>
    %181 = arith.mulf %176, %180 : vector<4x32xf32>
    %182 = vector.broadcast %4 : vector<1x32xf32> to vector<4x32xf32>
    %183 = arith.mulf %181, %182 : vector<4x32xf32>
    %184 = vector.broadcast %5 : vector<1x32xf32> to vector<4x32xf32>
    %185 = arith.addf %183, %184 : vector<4x32xf32>
    %186 = arith.truncf %185 : vector<4x32xf32> to vector<4x32xbf16>
    %c0_59 = arith.constant 0 : index
    %c0_60 = arith.constant 0 : index
    %187 = vector.load %arg7[%c0_59, %c0_60] : memref<32x64xbf16, #tpu.memory_space<vmem>>, vector<32x64xbf16>
    %cst_61 = arith.constant dense<0.000000e+00> : vector<4x64xf32>
    %188 = tpu.matmul %186, %187, %cst_61 {dimension_numbers = #tpu.dot_dimension_numbers<[1], [0], [0], [1], [0, 0, 1, 1], [], []>} : vector<4x32xbf16>, vector<32x64xbf16>, vector<4x64xf32> -> vector<4x64xf32>
    %c0_62 = arith.constant 0 : index
    %c0_63 = arith.constant 0 : index
    %189 = vector.load %arg8[%c0_62, %c0_63] : memref<1x64xf32, #tpu.memory_space<vmem>>, vector<1x64xf32>
    %190 = vector.broadcast %189 : vector<1x64xf32> to vector<4x64xf32>
    %191 = arith.addf %188, %190 : vector<4x64xf32>
    %192 = arith.mulf %191, %191 : vector<4x64xf32>
    %193 = arith.mulf %191, %192 : vector<4x64xf32>
    %cst_64 = arith.constant 4.471500e-02 : f32
    %194 = vector.broadcast %cst_64 : f32 to vector<4x64xf32>
    %195 = arith.mulf %194, %193 : vector<4x64xf32>
    %196 = arith.addf %191, %195 : vector<4x64xf32>
    %cst_65 = arith.constant 0.797884583 : f32
    %197 = vector.broadcast %cst_65 : f32 to vector<4x64xf32>
    %198 = arith.mulf %197, %196 : vector<4x64xf32>
    %199 = math.tanh %198 : vector<4x64xf32>
    %cst_66 = arith.constant 1.000000e+00 : f32
    %200 = vector.broadcast %cst_66 : f32 to vector<4x64xf32>
    %201 = arith.addf %200, %199 : vector<4x64xf32>
    %cst_67 = arith.constant 5.000000e-01 : f32
    %202 = vector.broadcast %cst_67 : f32 to vector<4x64xf32>
    %203 = arith.mulf %202, %201 : vector<4x64xf32>
    %204 = arith.mulf %191, %203 : vector<4x64xf32>
    %205 = arith.truncf %204 : vector<4x64xf32> to vector<4x64xbf16>
    %c0_68 = arith.constant 0 : index
    %c0_69 = arith.constant 0 : index
    %206 = vector.load %arg9[%c0_68, %c0_69] : memref<64x32xbf16, #tpu.memory_space<vmem>>, vector<64x32xbf16>
    %cst_70 = arith.constant dense<0.000000e+00> : vector<4x32xf32>
    %207 = tpu.matmul %205, %206, %cst_70 {dimension_numbers = #tpu.dot_dimension_numbers<[1], [0], [0], [1], [0, 0, 1, 1], [], []>} : vector<4x64xbf16>, vector<64x32xbf16>, vector<4x32xf32> -> vector<4x32xf32>
    %208 = vector.broadcast %6 : vector<1x32xf32> to vector<4x32xf32>
    %209 = arith.addf %207, %208 : vector<4x32xf32>
    %210 = arith.addf %209, %185 : vector<4x32xf32>
    %cst_71 = arith.constant dense<0.000000e+00> : vector<4xf32>
    %211 = vector.multi_reduction <add>, %210, %cst_71 [1] : vector<4x32xf32> to vector<4xf32>
    %212 = vector.shape_cast %211 : vector<4xf32> to vector<4x1xf32>
    %cst_72 = arith.constant 3.200000e+01 : f32
    %213 = vector.broadcast %cst_72 : f32 to vector<4x1xf32>
    %214 = arith.divf %212, %213 : vector<4x1xf32>
    %215 = vector.broadcast %214 : vector<4x1xf32> to vector<4x32xf32>
    %216 = arith.subf %210, %215 : vector<4x32xf32>
    %217 = arith.mulf %216, %216 : vector<4x32xf32>
    %cst_73 = arith.constant dense<0.000000e+00> : vector<4xf32>
    %218 = vector.multi_reduction <add>, %217, %cst_73 [1] : vector<4x32xf32> to vector<4xf32>
    %219 = vector.shape_cast %218 : vector<4xf32> to vector<4x1xf32>
    %cst_74 = arith.constant 3.200000e+01 : f32
    %220 = vector.broadcast %cst_74 : f32 to vector<4x1xf32>
    %221 = arith.divf %219, %220 : vector<4x1xf32>
    %222 = vector.broadcast %214 : vector<4x1xf32> to vector<4x32xf32>
    %223 = arith.subf %210, %222 : vector<4x32xf32>
    %cst_75 = arith.constant 9.99999996E-13 : f32
    %224 = vector.broadcast %cst_75 : f32 to vector<4x1xf32>
    %225 = arith.addf %221, %224 : vector<4x1xf32>
    %226 = math.rsqrt %225 : vector<4x1xf32>
    %227 = vector.broadcast %226 : vector<4x1xf32> to vector<4x32xf32>
    %228 = arith.mulf %223, %227 : vector<4x32xf32>
    %229 = vector.broadcast %7 : vector<1x32xf32> to vector<4x32xf32>
    %230 = arith.mulf %228, %229 : vector<4x32xf32>
    %231 = vector.broadcast %8 : vector<1x32xf32> to vector<4x32xf32>
    %232 = arith.addf %230, %231 : vector<4x32xf32>
    %233 = vector.extract_strided_slice %232 {offsets = [0, 0], sizes = [2, 32], strides = [1, 1]} : vector<4x32xf32> to vector<2x32xf32>
    %234 = vector.extract_strided_slice %232 {offsets = [2, 0], sizes = [2, 32], strides = [1, 1]} : vector<4x32xf32> to vector<2x32xf32>
    %235 = arith.mulf %233, %234 : vector<2x32xf32>
    %cst_76 = arith.constant dense<0.000000e+00> : vector<2xf32>
    %236 = vector.multi_reduction <add>, %235, %cst_76 [1] : vector<2x32xf32> to vector<2xf32>
    %237 = vector.shape_cast %236 : vector<2xf32> to vector<2x1xf32>
    %238 = arith.mulf %233, %233 : vector<2x32xf32>
    %cst_77 = arith.constant dense<0.000000e+00> : vector<2xf32>
    %239 = vector.multi_reduction <add>, %238, %cst_77 [1] : vector<2x32xf32> to vector<2xf32>
    %240 = vector.shape_cast %239 : vector<2xf32> to vector<2x1xf32>
    %241 = math.sqrt %240 : vector<2x1xf32>
    %242 = arith.mulf %234, %234 : vector<2x32xf32>
    %cst_78 = arith.constant dense<0.000000e+00> : vector<2xf32>
    %243 = vector.multi_reduction <add>, %242, %cst_78 [1] : vector<2x32xf32> to vector<2xf32>
    %244 = vector.shape_cast %243 : vector<2xf32> to vector<2x1xf32>
    %245 = math.sqrt %244 : vector<2x1xf32>
    %cst_79 = arith.constant 5.000000e-01 : f32
    %246 = vector.broadcast %cst_79 : f32 to vector<2x1xf32>
    %247 = arith.mulf %246, %237 : vector<2x1xf32>
    %cst_80 = arith.constant 9.99999993E-9 : f32
    %248 = vector.broadcast %cst_80 : f32 to vector<2x1xf32>
    %249 = arith.maximumf %241, %248 : vector<2x1xf32>
    %cst_81 = arith.constant 9.99999993E-9 : f32
    %250 = vector.broadcast %cst_81 : f32 to vector<2x1xf32>
    %251 = arith.maximumf %245, %250 : vector<2x1xf32>
    %252 = arith.mulf %249, %251 : vector<2x1xf32>
    %253 = arith.divf %247, %252 : vector<2x1xf32>
    %cst_82 = arith.constant 5.000000e-01 : f32
    %254 = vector.broadcast %cst_82 : f32 to vector<2x1xf32>
    %255 = arith.addf %254, %253 : vector<2x1xf32>
    %c0_83 = arith.constant 0 : index
    %c0_84 = arith.constant 0 : index
    %256 = vector.load %arg3[%c0_83, %c0_84] : memref<2x1xf32, #tpu.memory_space<vmem>>, vector<2x1xf32>
    %cst_85 = arith.constant 9.99999997E-7 : f32
    %257 = vector.broadcast %cst_85 : f32 to vector<2x1xf32>
    %258 = arith.addf %255, %257 : vector<2x1xf32>
    %259 = math.log %258 : vector<2x1xf32>
    %260 = arith.mulf %256, %259 : vector<2x1xf32>
    %cst_86 = arith.constant 1.000000e+00 : f32
    %261 = vector.broadcast %cst_86 : f32 to vector<2x1xf32>
    %262 = arith.subf %261, %256 : vector<2x1xf32>
    %cst_87 = arith.constant 1.000000e+00 : f32
    %263 = vector.broadcast %cst_87 : f32 to vector<2x1xf32>
    %264 = arith.subf %263, %255 : vector<2x1xf32>
    %cst_88 = arith.constant 9.99999997E-7 : f32
    %265 = vector.broadcast %cst_88 : f32 to vector<2x1xf32>
    %266 = arith.addf %264, %265 : vector<2x1xf32>
    %267 = math.log %266 : vector<2x1xf32>
    %268 = arith.mulf %262, %267 : vector<2x1xf32>
    %269 = arith.addf %260, %268 : vector<2x1xf32>
    %270 = vector.shape_cast %269 : vector<2x1xf32> to vector<1x2x1xf32>
    %cst_89 = arith.constant dense<0.000000e+00> : vector<1xf32>
    %271 = vector.multi_reduction <add>, %270, %cst_89 [1, 2] : vector<1x2x1xf32> to vector<1xf32>
    %272 = vector.shape_cast %271 : vector<1xf32> to vector<1x1x1xf32>
    %273 = vector.extract %272[0, 0, 0] : f32 from vector<1x1x1xf32>
    %cst_90 = arith.constant 0.000000e+00 : f32
    %274 = arith.subf %cst_90, %273 : f32
    %cst_91 = arith.constant 2.000000e+00 : f32
    %275 = arith.divf %274, %cst_91 : f32
    %cst_92 = arith.constant 0.000000e+00 : f32
    %276 = vector.broadcast %cst_92 : f32 to vector<4x96xf32>
    %277 = tpu.concatenate %232, %276 in 1 : vector<4x32xf32>, vector<4x96xf32> -> vector<4x128xf32>
    %278 = vector.shape_cast %255 : vector<2x1xf32> to vector<2x1xf32>
    %279 = vector.broadcast %278 : vector<2x1xf32> to vector<2x128xf32>
    %280 = vector.broadcast %275 : f32 to vector<1x1xf32>
    %281 = vector.shape_cast %280 : vector<1x1xf32> to vector<1x1xf32>
    %282 = vector.broadcast %281 : vector<1x1xf32> to vector<1x128xf32>
    %cst_93 = arith.constant 0.000000e+00 : f32
    %283 = vector.broadcast %cst_93 : f32 to vector<1x128xf32>
    %284 = tpu.concatenate %277, %279, %282, %283 in 0 : vector<4x128xf32>, vector<2x128xf32>, vector<1x128xf32>, vector<1x128xf32> -> vector<8x128xf32>
    %c0_94 = arith.constant 0 : index
    %c0_95 = arith.constant 0 : index
    %285 = vector.load %arg11[%c0_94, %c0_95] : memref<8x128xf32, #tpu.memory_space<vmem>>, vector<8x128xf32>
    tpu.vector_store %arg11[%c0_94, %c0_95], %284 {strides = array<i32>} : memref<8x128xf32, #tpu.memory_space<vmem>>, vector<8x128xf32>,
    return
  }
}

</mosaic_0001>

<bundles_post_ra>
// kernel: mtb_pretrain_forward.1
= control target key start
LH: loop header
LB: loop body
LE: loop exit
PB: predicated region body
PF: predicated region fallthrough
CT: control target
= control target key end

     0   :  { %16 = vsyncpa [#allocation3], 0  ;;  %s1447_s20 = smov [#allocation2]   ;;  %s1906_s0 = inlined_call_operand.vmem [shape: s32[4], index: 0, kind: input, shape index: {}]   ;;  %s1907_s1 = inlined_call_operand.vmem [shape: f32[4,8,32], index: 1, kind: input, shape index: {}]   ;;  %s1908_s2 = inlined_call_operand.vmem [shape: f32[4,8], index: 2, kind: input, shape index: {}]   ;;  %s1909_s3 = inlined_call_operand.vmem [shape: f32[2,1], index: 3, kind: input, shape index: {}]   ;;  %s1910_s4 = inlined_call_operand.vmem [shape: bf16[32,96], index: 4, kind: input, shape index: {}]   ;;  %s1911_s5 = inlined_call_operand.vmem [shape: f32[1,96], index: 5, kind: input, shape index: {}]   ;;  %s1912_s6 = inlined_call_operand.vmem [shape: bf16[32,32], index: 6, kind: input, shape index: {}]   ;;  %s1913_s7 = inlined_call_operand.vmem [shape: bf16[32,64], index: 7, kind: input, shape index: {}]   ;;  %s1914_s8 = inlined_call_operand.vmem [shape: f32[1,64], index: 8, kind: input, shape index: {}]   ;;  %s1915_s9 = inlined_call_operand.vmem [shape: bf16[64,32], index: 9, kind: input, shape index: {}]   ;;  %s1916_s10 = inlined_call_operand.vmem [shape: f32[8,32], index: 10, kind: input, shape index: {}]   ;;  %s1917_s11 = inlined_call_operand.vmem [shape: f32[8,128], index: 11, kind: output, shape index: {}]  }
   0x1   :  { %s22_s19 = sshll.u32 %s1906_s0, 4  ;;  %s23_s19 = int_to_ptr.vmem [resolvable:$true] %s22_s19 }
   0x2   :  { %25 = dma.vmem_to_smem %s23_s19, 16, %s1447_s20, [#allocation3]  }
   0x3   :  { %1445 = dma.done.wait [#allocation3], 16  }
   0x4   :  { %1446 = vsyncadd [#allocation3], 4294967280 }
   0x5   :  { %50 = sfence }
   0x6   :  { %v1520_v0 = vld [vmem:[%s1907_s1 + $0x10] sm:$0xff]  ;;  %vm1918_vm0 = vcmask 261120   ;;  %v1525_v1 = vld [vmem:[%s1907_s1] sm:$0xff]  ;;  %s164_s25 = sld [smem:[#allocation2]]  ;;  %v1534_v4 = vld [vmem:[%s1907_s1 + $0x18] sm:$0xff]  ;;  %vm200_vm1 = vcmask 1040384  }
   0x7   :  { %v65_v2 = vsel %vm1918_vm0, %v1520_v0, 0.0  ;;  %v59_v3 = vsel %vm1918_vm0, %v1525_v1, 0.0  ;;  %s1273_s0 = sld [smem:[#allocation2 + $0x1]]  ;;  %v1539_v5 = vld [vmem:[%s1907_s1 + $0x8] sm:$0xff]  ;;  %v68_v6 = vsel %vm1918_vm0, %v1534_v4, 0.0  ;;  %vm202_vm2 = vcmask 1041408  }
   0x8   :  { %66 = vadd.xlane.f32.xlu1 %v65_v2  ;;  %60 = vadd.xlane.f32.xlu0 %v59_v3  ;;  %s1276_s26 = sld [smem:[#allocation2 + $0x2]]  ;;  %v62_v7 = vsel %vm1918_vm0, %v1539_v5, 0.0  ;;  %vm204_vm3 = vcmask 1042432   ;;  %vm1919_vm4 = vcmask 257024   ;;  %v1448_v19 = vmov 32.0   ;;  %v1346_v26 = vld [vmem:[%s1910_s4 + $0x8] sm:$0xff] }
   0x9   :  { %s1279_s12 = sld [smem:[#allocation2 + $0x3]]  ;;  %1370 = vrcp.f32 %v1448_v19  ;;  %297 = vmatpush.bf16.msra.mxu1 %v1346_v26  ;;  %v1345_v31 = vld [vmem:[%s1910_s4] sm:$0xff]  ;;  %s1449_s4 = smov 96  }
   0xc   :  { %s1272_s13 = sadd.s32 4294967294, %s164_s25 }
   0xd   :  { %p166_p0 = scmp.gt.s32.totalorder %s1272_s13, 0  ;;  %s1274_s14 = sadd.s32 4294967294, %s1273_s0  ;;  %298 = vmatpush.bf16.msra.mxu1 %v1345_v31 }
   0xe   :  { %p172_p1 = scmp.gt.s32.totalorder %s1274_s14, 0  ;;  %s1277_s15 = sadd.s32 4294967294, %s1276_s26 }
   0xf   :  { %s1931_s13 = smov (!%p166_p0, %s1272_s13), 0  ;;  %p179_p2 = scmp.gt.s32.totalorder %s1277_s15, 0  ;;  %v1371_v20 = vpop.eup %1370 }
  0x10   :  { %69 = vadd.xlane.f32.xlu1 %v68_v6  ;;  %63 = vadd.xlane.f32.xlu0 %v62_v7  ;;  %s1933_s14 = smov (!%p172_p1, %s1274_s14), 0  ;;  %s168_s18 = scalar_lea.vmem %s1907_s1, %s1931_s13  ;;  %v72_v21 = vmul.f32 32.0, %v1371_v20  ;;  %vm76_vm5 = vweird.f32 %v1371_v20 }
  0x11   :  { %s1266_s21 = scalar_lea.vmem %s1907_s1, %s1933_s14  ;;  %s1280_s22 = sadd.s32 4294967294, %s1279_s12  ;;  %v169_v8 = vld [vmem:[%s168_s18] sm:$0x1] }
  0x12   :  { %v1275_v9 = vld [vmem:[%s1266_s21 + $0x8] sm:$0x1]  ;;  %s1935_s15 = smov (!%p179_p2, %s1277_s15), 0  ;;  %p186_p3 = scmp.gt.s32.totalorder %s1280_s22, 0  ;;  %v73_v22 = vsub.f32 1.0, %v72_v21 }
  0x13   :  { %v192_v10 = vrot.slane %v1275_v9, 7  ;;  %s1268_s25 = scalar_lea.vmem %s1907_s1, %s1935_s15  ;;  %s1450_s15 = smov 112  }
  0x14   :  { %v1278_v11 = vld [vmem:[%s1268_s25 + $0x10] sm:$0x1]  ;;  %s1937_s22 = smov (!%p186_p3, %s1280_s22), 0  ;;  %v74_v23 = vmul.f32 %v1371_v20, %v73_v22 }
  0x15   :  { %v201_v12 = vsel %vm200_vm1, %v169_v8, %v192_v10  ;;  %v195_v13 = vrot.slane %v1278_v11, 6  ;;  %s1270_s27 = scalar_lea.vmem %s1907_s1, %s1937_s22 }
  0x16   :  { %v1281_v14 = vld [vmem:[%s1270_s27 + $0x18] sm:$0x1]  ;;  %v75_v24 = vadd.f32 %v1371_v20, %v74_v23  ;;  %v1629_v23 = vld [vmem:[%s1916_s10] sm:$0xff] }
  0x17   :  { %v203_v15 = vsel %vm202_vm2, %v201_v12, %v195_v13  ;;  %v198_v16 = vrot.slane %v1281_v14, 5  ;;  %v1619_v13 = vld [vmem:[%s1911_s5] ss:$0 sm:$0xff] }
  0x18   :  { %v1558_v25 = vsel %vm76_vm5, %v1371_v20, %v75_v24 }
  0x19   :  { %v205_v17 = vsel %vm204_vm3, %v203_v15, %v198_v16 }
  0x1a   :  { %v207_v18 = vsel %vm1919_vm4, %v205_v17, 0.0 }
  0x1b   :  { %208 = vadd.xlane.f32.xlu2 %v207_v18 }
  0x7b   :  { %v67_v27 = vpop.xlane.xlu1 %66  ;;  %v61_v28 = vpop.xlane.xlu0 %60 }
  0x7c   :  { %v80_v29 = vmul.f32 %v1558_v25, %v67_v27  ;;  %v78_v30 = vmul.f32 %v1558_v25, %v61_v28 }
  0x7e   :  { %v1569_v32 = vsub.f32 %v1520_v0, %v80_v29  ;;  %v1572_v33 = vsub.f32 %v1525_v1, %v78_v30  ;;  %v154_v29 = vperm.slane %v1629_v23, 0 }
  0x80   :  { %v88_v34 = vmul.f32 %v1569_v32, %v1569_v32  ;;  %v86_v35 = vmul.f32 %v1572_v33, %v1572_v33 }
  0x82   :  { %v96_v36 = vsel %vm1918_vm0, %v88_v34, 0.0  ;;  %v90_v37 = vsel %vm1918_vm0, %v86_v35, 0.0 }
  0x83   :  { %97 = vadd.xlane.f32.xlu1 %v96_v36  ;;  %v70_v38 = vpop.xlane.xlu1 %69  ;;  %91 = vadd.xlane.f32.xlu2 %v90_v37  ;;  %v64_v39 = vpop.xlane.xlu0 %63 }
  0x84   :  { %v81_v40 = vmul.f32 %v1558_v25, %v70_v38  ;;  %v79_v41 = vmul.f32 %v1558_v25, %v64_v39  ;;  %v159_v38 = vperm.slane %v1629_v23, 1 }
  0x86   :  { %v1583_v42 = vsub.f32 %v1534_v4, %v81_v40  ;;  %v1586_v43 = vsub.f32 %v1539_v5, %v79_v41 }
  0x88   :  { %v89_v44 = vmul.f32 %v1583_v42, %v1583_v42  ;;  %v87_v45 = vmul.f32 %v1586_v43, %v1586_v43 }
  0x8a   :  { %v99_v46 = vsel %vm1918_vm0, %v89_v44, 0.0  ;;  %v93_v47 = vsel %vm1918_vm0, %v87_v45, 0.0 }
  0x8b   :  { %100 = vadd.xlane.f32.xlu2 %v99_v46  ;;  %94 = vadd.xlane.f32.xlu0 %v93_v47 }
  0x8e   :  { %v209_v48 = vpop.xlane.xlu2 %208 }
  0x8f   :  { %v210_v49 = vmul.f32 %v209_v48, %v1558_v25 }
  0x91   :  { %v1595_v50 = vsub.f32 %v205_v17, %v210_v49 }
  0x93   :  { %v212_v51 = vmul.f32 %v1595_v50, %v1595_v50 }
  0x95   :  { %v213_v52 = vsel %vm1919_vm4, %v212_v51, 0.0 }
  0x96   :  { %214 = vadd.xlane.f32.xlu0 %v213_v52 }
  0x9c   :  { %252 = vrot.lane.b32.xlu1 %v1346_v26, %s1449_s4 }
  0xa3   :  { %250 = vrot.lane.b32.xlu2 %v1345_v31, %s1449_s4 }
  0xaa   :  { %256 = vrot.lane.b32.xlu0 %v1619_v13, %s1449_s4 }
  0xf6   :  { %v92_v53 = vpop.xlane.xlu2 %91  ;;  %v98_v54 = vpop.xlane.xlu1 %97 }
  0xf7   :  { %v102_v55 = vmul.f32 %v92_v53, %v1558_v25  ;;  %v104_v57 = vmul.f32 %v98_v54, %v1558_v25 }
  0xf9   :  { %v106_v56 = vadd.f32 1e-12, %v102_v55  ;;  %v1604_v58 = vadd.f32 1e-12, %v104_v57 }
  0xfb   :  { %1372 = vrsqrt.f32 %v106_v56  ;;  %vm116_vm7 = vweird.f32 %v106_v56  ;;  %vm136_vm15 = vweird.f32 %v1604_v58 }
  0xfc   :  { %1374 = vrsqrt.f32 %v1604_v58 }
  0xfe   :  { %v101_v59 = vpop.xlane.xlu2 %100  ;;  %v95_v60 = vpop.xlane.xlu0 %94 }
  0xff   :  { %v105_v61 = vmul.f32 %v101_v59, %v1558_v25  ;;  %v103_v62 = vmul.f32 %v95_v60, %v1558_v25 }
 0x101   :  { %v109_v63 = vadd.f32 1e-12, %v105_v61  ;;  %v107_v0 = vadd.f32 1e-12, %v103_v62  ;;  %v1373_v1 = vpop.eup %1372 }
 0x102   :  { %v111_v2 = vmul.f32 %v1373_v1, %v106_v56  ;;  %v1609_v5 = vpop.eup %1374  ;;  %vm117_vm6 = vweird.f32 %v1373_v1 }
 0x103   :  { %1376 = vrsqrt.f32 %v109_v63  ;;  %v131_v10 = vmul.f32 %v1609_v5, %v1604_v58  ;;  %vm118_vm8 = vmor %vm116_vm7, %vm117_vm6  ;;  %vm126_vm10 = vweird.f32 %v107_v0  ;;  %vm146_vm12 = vweird.f32 %v109_v63 }
 0x104   :  { %1378 = vrsqrt.f32 %v107_v0  ;;  %v112_v3 = vmul.f32 %v1373_v1, %v111_v2  ;;  %vm137_vm1 = vweird.f32 %v1609_v5  ;;  %vm332_vm7 = vcmask 130048  }
 0x105   :  { %v132_v19 = vmul.f32 %v1609_v5, %v131_v10  ;;  %vm138_vm2 = vmor %vm136_vm15, %vm137_vm1 }
 0x106   :  { %v113_v4 = vmul.f32 0.5, %v112_v3  ;;  %v251_v24 = vpop.permute.xlu2 %250 }
 0x107   :  { %v133_v30 = vmul.f32 0.5, %v132_v19 }
 0x108   :  { %v114_v7 = vsub.f32 1.5, %v113_v4 }
 0x109   :  { %v1611_v6 = vpop.eup %1376  ;;  %v215_v14 = vpop.xlane.xlu0 %214  ;;  %v134_v40 = vsub.f32 1.5, %v133_v30 }
 0x10a   :  { %v1379_v8 = vpop.eup %1378  ;;  %v141_v9 = vmul.f32 %v1611_v6, %v109_v63  ;;  %v115_v11 = vmul.f32 %v1373_v1, %v114_v7  ;;  %v216_v17 = vmul.f32 %v215_v14, %v1558_v25  ;;  %vm147_vm13 = vweird.f32 %v1611_v6 }
 0x10b   :  { %v121_v12 = vmul.f32 %v1379_v8, %v107_v0  ;;  %vm127_vm9 = vweird.f32 %v1379_v8  ;;  %vm1637_vm14 = vmor %vm146_vm12, %vm147_vm13 }
 0x10c   :  { %v142_v15 = vmul.f32 %v1611_v6, %v141_v9  ;;  %v119_v20 = vsel %vm118_vm8, %v1373_v1, %v115_v11  ;;  %v217_v22 = vadd.f32 1e-12, %v216_v17  ;;  %vm128_vm11 = vmor %vm126_vm10, %vm127_vm9  ;;  %vm527_vm8 = vcmask 1043456  }
 0x10d   :  { %v122_v16 = vmul.f32 %v1379_v8, %v121_v12  ;;  %v150_v28 = vmul.f32 %v119_v20, %v1572_v33  ;;  %vm417_vm9 = vcmask 57344  }
 0x10e   :  { %v253_v18 = vpop.permute.xlu1 %252  ;;  %v143_v26 = vmul.f32 0.5, %v142_v15  ;;  %1380 = vrsqrt.f32 %v217_v22  ;;  %vm224_vm3 = vweird.f32 %v217_v22 }
 0x10f   :  { %v123_v21 = vmul.f32 0.5, %v122_v16  ;;  %271 = vmatpush.bf16.msra.mxu0 %v253_v18  ;;  %v155_v37 = vmul.f32 %v154_v29, %v150_v28 }
 0x110   :  { %v144_v34 = vsub.f32 1.5, %v143_v26 }
 0x111   :  { %v124_v27 = vsub.f32 1.5, %v123_v21  ;;  %v160_v47 = vadd.f32 %v159_v38, %v155_v37 }
 0x112   :  { %v145_v44 = vmul.f32 %v1611_v6, %v144_v34 }
 0x113   :  { %v125_v31 = vmul.f32 %v1379_v8, %v124_v27  ;;  %272 = vmatpush.bf16.msra.mxu0 %v251_v24 }
 0x114   :  { %v1381_v39 = vpop.eup %1380  ;;  %v149_v52 = vsel %vm1637_vm14, %v1611_v6, %v145_v44 }
 0x115   :  { %v129_v35 = vsel %vm128_vm11, %v1379_v8, %v125_v31  ;;  %v219_v33 = vmul.f32 %v1381_v39, %v217_v22  ;;  %vm225_vm5 = vweird.f32 %v1381_v39  ;;  %v153_v55 = vmul.f32 %v149_v52, %v1583_v42 }
 0x116   :  { %v151_v36 = vmul.f32 %v129_v35, %v1586_v43  ;;  %v135_v43 = vmul.f32 %v1609_v5, %v134_v40  ;;  %vm226_vm6 = vmor %vm224_vm3, %vm225_vm5  ;;  %vm523_vm3 = vcmask 64512  }
 0x117   :  { %v220_v46 = vmul.f32 %v1381_v39, %v219_v33  ;;  %v158_v60 = vmul.f32 %v154_v29, %v153_v55 }
 0x118   :  { %v156_v41 = vmul.f32 %v154_v29, %v151_v36  ;;  %v139_v54 = vsel %vm138_vm2, %v1609_v5, %v135_v43 }
 0x119   :  { %v221_v49 = vmul.f32 0.5, %v220_v46  ;;  %v152_v57 = vmul.f32 %v139_v54, %v1569_v32  ;;  %v163_v0 = vadd.f32 %v159_v38, %v158_v60 }
 0x11a   :  { %v161_v48 = vadd.f32 %v159_v38, %v156_v41 }
 0x11b   :  { %v222_v53 = vsub.f32 1.5, %v221_v49  ;;  %v157_v62 = vmul.f32 %v154_v29, %v152_v57 }
 0x11c   :  { %v236_v51 = vpack.c.bf16 %v161_v48, %v160_v47  ;;  %v257_v3 = vpop.permute.xlu0 %256 }
 0x11d   :  { %v223_v56 = vmul.f32 %v1381_v39, %v222_v53  ;;  %v162_v2 = vadd.f32 %v159_v38, %v157_v62 }
 0x11e   :  { %1290 = vmatmul.msk.bf16.vlgmr.msra.gmra.mxu0 %vm1918_vm0, %v236_v51  ;;  %v57_v51 = vld [vmem:[%s1908_s2] sm:$0xf]  ;;  %s1451_s2 = smov 80  }
 0x11f   :  { %v227_v58 = vsel %vm226_vm6, %v1381_v39, %v223_v56  ;;  %v237_v42 = vpack.c.bf16 %v163_v0, %v162_v2  ;;  %v311_v52 = vsub.f32 1.0, %v57_v51 }
 0x120   :  { %v228_v59 = vmul.f32 %v227_v58, %v1595_v50 }
 0x121   :  { %v1702_v53 = vmul.f32 -1e+09, %v311_v52 }
 0x122   :  { %v229_v61 = vmul.f32 %v228_v59, %v154_v29 }
 0x123   :  { %v314_v56 = vrot.slane %v1702_v53, 1  ;;  %v315_v60 = vrot.slane %v1702_v53, 2 }
 0x124   :  { %v1652_v63 = vadd.f32 %v229_v61, %v159_v38 }
 0x126   :  { %v284_v1 = vpack.c.bf16 %v1652_v63, %v1652_v63 }
 0x128   :  { %1292 = vmatmul.msk.bf16.vlgmr.msra.gmra.mxu1 %vm1918_vm0, %v284_v1 }
 0x12e   :  { %1291 = vmatmul.msk.bf16.gmra.mxu0 %vm1918_vm0, %v237_v42 }
 0x19b   :  { %v274_v32 = vpop.f32.mrf.mxu0 }
 0x19c   :  { %v275_v4 = vadd.f32 %v274_v32, %v257_v3 }
 0x19e   :  { %v328_v50 = vpack.c.bf16 %v275_v4, %v275_v4 }
 0x1a0   :  { %v519_v5 = vunpack.c.l.b16 %v328_v50  ;;  %v337_v6 = vsel %vm332_vm7, %v328_v50, 0 }
 0x1a1   :  { %346 = vmatpush.bf16.xpose.msra.mxu2 %v337_v6 }
 0x1a2   :  { %v1659_v7 = vpack.c.b16 %v519_v5, %v519_v5  ;;  %v316_v5 = vrot.slane %v1702_v53, 3 }
 0x1a3   :  { %v276_v8 = vpop.f32.mrf.mxu0 }
 0x1a4   :  { %v277_v9 = vadd.f32 %v276_v8, %v257_v3  ;;  %625 = vrot.lane.b32.xlu2 %v1659_v7, %s1450_s15  ;;  %521 = vrot.lane.b32.xlu0 %v1659_v7, %s1449_s4 }
 0x1a5   :  { %v300_v12 = vpop.f32.mrf.mxu1 }
 0x1a6   :  { %v329_v10 = vpack.c.bf16 %v277_v9, %v277_v9  ;;  %v301_v15 = vadd.f32 %v1619_v13, %v300_v12 }
 0x1a8   :  { %v545_v11 = vunpack.c.l.b16 %v329_v10  ;;  %v356_v14 = vsel %vm332_vm7, %v329_v10, 0  ;;  %v1669_v17 = vpack.c.bf16 %v301_v15, %v301_v15  ;;  %v305_v19 = vrot.slane %v301_v15, 1 }
 0x1a9   :  { %365 = vmatpush.bf16.xpose.msra.mxu3 %v356_v14  ;;  %v306_v28 = vrot.slane %v301_v15, 2  ;;  %v307_v38 = vrot.slane %v301_v15, 3 }
 0x1aa   :  { %v1667_v16 = vpack.c.b16 %v545_v11, %v545_v11  ;;  %1293 = vmatmul.msk.bf16.vlgmr.msra.gmra.mxu2 %vm332_vm7, %v1669_v17  ;;  %v1675_v22 = vpack.c.bf16 %v305_v19, %v305_v19  ;;  %v621_v15 = vunpack.c.l.b16 %v1669_v17 }
 0x1ab   :  { %v279_v18 = vpop.f32.mrf.mxu0  ;;  %v1684_v34 = vpack.c.bf16 %v306_v28, %v306_v28  ;;  %v327_v39 = vpack.c.bf16 %v307_v38, %v307_v38 }
 0x1ac   :  { %v280_v20 = vadd.f32 %v279_v18, %v257_v3  ;;  %547 = vrot.lane.b32.xlu1 %v1667_v16, %s1449_s4  ;;  %v622_v18 = vpack.c.b16 %v621_v15, %v621_v15 }
 0x1ad   :  { %v302_v26 = vpop.f32.mrf.mxu1  ;;  %v699_v12 = vunpack.c.l.b16 %v327_v39 }
 0x1ae   :  { %v330_v21 = vpack.c.bf16 %v280_v20, %v280_v20 }
 0x1af   :  { %v700_v14 = vpack.c.b16 %v699_v12, %v699_v12 }
 0x1b0   :  { %v569_v24 = vunpack.c.l.b16 %v330_v21  ;;  %1294 = vmatmul.msk.bf16.vlgmr.msra.gmra.mxu3 %vm332_vm7, %v1675_v22  ;;  %v375_v13 = vsel %vm332_vm7, %v330_v21, 0 }
 0x1b1   :  { %384 = vmatpush.bf16.xpose.msrb.mxu1 %v375_v13 }
 0x1b2   :  { %v1680_v27 = vpack.c.b16 %v569_v24, %v569_v24 }
 0x1b3   :  { %v281_v29 = vpop.f32.mrf.mxu0 }
 0x1b4   :  { %v282_v30 = vadd.f32 %v281_v29, %v257_v3  ;;  %571 = vrot.lane.b32.xlu0 %v1680_v27, %s1449_s4 }
 0x1b6   :  { %v331_v31 = vpack.c.bf16 %v282_v30, %v282_v30 }
 0x1b8   :  { %v593_v35 = vunpack.c.l.b16 %v331_v31  ;;  %1295 = vmatmul.msk.bf16.vlgmr.msrb.gmra.mxu1 %vm332_vm7, %v1684_v34  ;;  %v394_v36 = vsel %vm332_vm7, %v331_v31, 0 }
 0x1b9   :  { %403 = vmatpush.bf16.xpose.msrb.mxu2 %v394_v36 }
 0x1ba   :  { %v1689_v37 = vpack.c.b16 %v593_v35, %v593_v35 }
 0x1bc   :  { %595 = vrot.lane.b32.xlu2 %v1689_v37, %s1449_s4 }
 0x1c0   :  { %1296 = vmatmul.msk.bf16.vlgmr.msrb.gmra.mxu2 %vm332_vm7, %v327_v39 }
 0x1fe   :  { %v626_v40 = vpop.permute.xlu2 %625 }
 0x1ff   :  { %v631_v46 = vsel %vm332_vm7, %v626_v40, 0 }
 0x216   :  { %v596_v33 = vpop.permute.xlu2 %595  ;;  %v522_v41 = vpop.permute.xlu0 %521 }
 0x217   :  { %v601_v44 = vsel %vm527_vm8, %v596_v33, 0  ;;  %v529_v45 = vsel %vm527_vm8, %v522_v41, 0 }
 0x218   :  { %538 = vmatpush.bf16.msrb.mxu3 %v529_v45  ;;  %610 = vmatpush.bf16.msra.mxu2 %v601_v44 }
 0x21c   :  { %640 = vmatpush.bf16.xpose.msra.mxu3 %v631_v46 }
 0x21e   :  { %v548_v47 = vpop.permute.xlu1 %547 }
 0x21f   :  { %v553_v48 = vsel %vm527_vm8, %v548_v47, 0 }
 0x220   :  { %562 = vmatpush.bf16.msrb.mxu0 %v553_v48  ;;  %v647_v48 = vunpack.c.l.b16 %v1675_v22 }
 0x226   :  { %v572_v43 = vpop.permute.xlu0 %571 }
 0x227   :  { %v577_v49 = vsel %vm527_vm8, %v572_v43, 0  ;;  %v648_v43 = vpack.c.b16 %v647_v48, %v647_v48 }
 0x228   :  { %586 = vmatpush.bf16.msra.mxu1 %v577_v49  ;;  %v673_v49 = vunpack.c.l.b16 %v1684_v34 }
 0x22a   :  { %v674_v51 = vpack.c.b16 %v673_v49, %v673_v49 }
 0x22d   :  { %v348_v54 = vpop.f32.mrf.mxu2 }
 0x22e   :  { %v409_v55 = vmul.f32 0.25, %v348_v54 }
 0x230   :  { %v413_v57 = vadd.f32 %v409_v55, %v1702_v53 }
 0x232   :  { %v418_v61 = vsel %vm417_vm9, %v413_v57, -inf }
 0x233   :  { %v367_v58 = vpop.f32.mrf.mxu3  ;;  %419 = vmax.xlane.f32.xlu2 %v418_v61 }
 0x234   :  { %v410_v59 = vmul.f32 0.25, %v367_v58 }
 0x235   :  { %v386_v62 = vpop.f32.mrf.mxu1  ;;  %v350_v2 = vpop.f32.mrf.mxu2 }
 0x236   :  { %v411_v0 = vmul.f32 0.25, %v386_v62  ;;  %v414_v1 = vadd.f32 %v410_v59, %v314_v56 }
 0x238   :  { %v421_v42 = vsel %vm417_vm9, %v414_v1, -inf  ;;  %v415_v3 = vadd.f32 %v411_v0, %v315_v60 }
 0x239   :  { %422 = vmax.xlane.f32.xlu0 %v421_v42 }
 0x23a   :  { %v424_v4 = vsel %vm417_vm9, %v415_v3, -inf }
 0x23b   :  { %v369_v32 = vpop.f32.mrf.mxu3  ;;  %425 = vmax.xlane.f32.xlu2 %v424_v4 }
 0x23d   :  { %v388_v50 = vpop.f32.mrf.mxu1 }
 0x243   :  { %v405_v6 = vpop.f32.mrf.mxu2 }
 0x244   :  { %v412_v8 = vmul.f32 0.25, %v405_v6 }
 0x246   :  { %v416_v9 = vadd.f32 %v412_v8, %v316_v5 }
 0x248   :  { %v427_v10 = vsel %vm417_vm9, %v416_v9, -inf }
 0x249   :  { %428 = vmax.xlane.f32.xlu1 %v427_v10 }
 0x24b   :  { %v407_v11 = vpop.f32.mrf.mxu2 }
 0x24d   :  { %703 = vrot.lane.b32.xlu0 %v1689_v37, %s1450_s15 }
 0x253   :  { %701 = vrot.lane.b32.xlu2 %v700_v14, %s1450_s15 }
 0x262   :  { %623 = vrot.lane.b32.xlu1 %v622_v18, %s1450_s15 }
 0x2a6   :  { %v420_v19 = vpop.xlane.xlu2 %419 }
 0x2a7   :  { %v430_v20 = vsub.f32 %v413_v57, %v420_v19 }
 0x2a9   :  { %v434_v21 = vmul.f32 1.442695, %v430_v20 }
 0x2ab   :  { %1382 = vpow2.f32 %v434_v21 }
 0x2ac   :  { %v423_v24 = vpop.xlane.xlu0 %422 }
 0x2ad   :  { %v431_v26 = vsub.f32 %v414_v1, %v423_v24 }
 0x2ae   :  { %v426_v28 = vpop.xlane.xlu2 %425 }
 0x2af   :  { %v436_v13 = vmul.f32 1.442695, %v431_v26  ;;  %v432_v29 = vsub.f32 %v415_v3, %v426_v28 }
 0x2b1   :  { %1384 = vpow2.f32 %v436_v13  ;;  %v1723_v30 = vpop.eup %1382  ;;  %v438_v31 = vmul.f32 1.442695, %v432_v29 }
 0x2b2   :  { %v442_v35 = vsel %vm417_vm9, %v1723_v30, 0.0 }
 0x2b3   :  { %1386 = vpow2.f32 %v438_v31  ;;  %443 = vadd.xlane.f32.xlu1 %v442_v35 }
 0x2b6   :  { %v1750_v54 = vpop.permute.xlu2 %701 }
 0x2b7   :  { %v1727_v17 = vpop.eup %1384 }
 0x2b8   :  { %v445_v36 = vsel %vm417_vm9, %v1727_v17, 0.0 }
 0x2b9   :  { %446 = vadd.xlane.f32.xlu2 %v445_v36  ;;  %v1731_v38 = vpop.eup %1386 }
 0x2ba   :  { %v448_v40 = vsel %vm417_vm9, %v1731_v38, 0.0 }
 0x2bb   :  { %449 = vadd.xlane.f32.xlu1 %v448_v40 }
 0x2bc   :  { %v429_v39 = vpop.xlane.xlu1 %428 }
 0x2bd   :  { %v433_v33 = vsub.f32 %v416_v9, %v429_v39 }
 0x2bf   :  { %v440_v41 = vmul.f32 1.442695, %v433_v33  ;;  %v704_v44 = vpop.permute.xlu0 %703 }
 0x2c0   :  { %v709_v45 = vsel %vm332_vm7, %v704_v44, 0 }
 0x2c1   :  { %1388 = vpow2.f32 %v440_v41  ;;  %718 = vmatpush.bf16.xpose.msrb.mxu2 %v709_v45 }
 0x2c7   :  { %v1736_v46 = vpop.eup %1388 }
 0x2c8   :  { %v451_v47 = vsel %vm417_vm9, %v1736_v46, 0.0 }
 0x2c9   :  { %452 = vadd.xlane.f32.xlu0 %v451_v47 }
 0x2d1   :  { %649 = vrot.lane.b32.xlu2 %v648_v43, %s1450_s15 }
 0x2d4   :  { %677 = vrot.lane.b32.xlu1 %v1680_v27, %s1450_s15  ;;  %v1748_v52 = vpop.permute.xlu1 %623 }
 0x2dd   :  { %651 = vrot.lane.b32.xlu0 %v1667_v16, %s1450_s15 }
 0x2e5   :  { %675 = vrot.lane.b32.xlu0 %v674_v51, %s1450_s15 }
 0x326   :  { %v444_v55 = vpop.xlane.xlu1 %443 }
 0x327   :  { %1390 = vrcp.f32 %v444_v55  ;;  %v465_v0 = vand.u32 2147483648, %v444_v55  ;;  %v463_v2 = vand.u32 2147483647, %v444_v55  ;;  %vm459_vm11 = vweird.f32 %v444_v55 }
 0x329   :  { %v466_v50 = vor.u32 1.1754944e-38, %v465_v0  ;;  %vm464_vm14 = vcmp.eq.f32.partialorder %v463_v2, 8.507059e+37 }
 0x32c   :  { %v447_v22 = vpop.xlane.xlu2 %446 }
 0x32d   :  { %1392 = vrcp.f32 %v447_v22  ;;  %v1391_v57 = vpop.eup %1390  ;;  %v478_v32 = vand.u32 2147483647, %v447_v22  ;;  %v480_v8 = vand.u32 2147483648, %v447_v22  ;;  %vm474_vm15 = vweird.f32 %v447_v22 }
 0x32e   :  { %v455_v58 = vmul.f32 %v1391_v57, %v444_v55  ;;  %v450_v59 = vpop.xlane.xlu1 %449  ;;  %vm460_vm10 = vweird.f32 %v1391_v57 }
 0x32f   :  { %1394 = vrcp.f32 %v450_v59  ;;  %vm461_vm12 = vmor %vm459_vm11, %vm460_vm10  ;;  %vm479_vm2 = vcmp.eq.f32.partialorder %v478_v32, 8.507059e+37  ;;  %v481_v18 = vor.u32 1.1754944e-38, %v480_v8  ;;  %v493_v19 = vand.u32 2147483647, %v450_v59 }
 0x330   :  { %v456_v62 = vsub.f32 1.0, %v455_v58  ;;  %v495_v20 = vand.u32 2147483648, %v450_v59  ;;  %vm489_vm6 = vweird.f32 %v450_v59 }
 0x331   :  { %vm494_vm11 = vcmp.eq.f32.partialorder %v493_v19, 8.507059e+37 }
 0x332   :  { %v457_v34 = vmul.f32 %v1391_v57, %v456_v62  ;;  %v496_v35 = vor.u32 1.1754944e-38, %v495_v20 }
 0x333   :  { %v1393_v61 = vpop.eup %1392 }
 0x334   :  { %v470_v1 = vmul.f32 %v1393_v61, %v447_v22  ;;  %v458_v3 = vadd.f32 %v1391_v57, %v457_v34  ;;  %vm475_vm13 = vweird.f32 %v1393_v61  ;;  %v650_v62 = vpop.permute.xlu2 %649 }
 0x335   :  { %v1395_v4 = vpop.eup %1394  ;;  %vm476_vm1 = vmor %vm474_vm15, %vm475_vm13 }
 0x336   :  { %v471_v42 = vsub.f32 1.0, %v470_v1  ;;  %v485_v9 = vmul.f32 %v1395_v4, %v450_v59  ;;  %v462_v10 = vsel %vm461_vm12, %v1391_v57, %v458_v3  ;;  %vm490_vm5 = vweird.f32 %v1395_v4 }
 0x337   :  { %v467_v12 = vsel %vm464_vm14, %v466_v50, %v462_v10  ;;  %vm491_vm10 = vmor %vm489_vm6, %vm490_vm5  ;;  %vm935_vm5 = vcmask 1043459  }
 0x338   :  { %v472_v6 = vmul.f32 %v1393_v61, %v471_v42  ;;  %v486_v14 = vsub.f32 1.0, %v485_v9  ;;  %v468_v15 = vmul.f32 %v1723_v30, %v467_v12 }
 0x33a   :  { %v473_v11 = vadd.f32 %v1393_v61, %v472_v6  ;;  %v487_v26 = vmul.f32 %v1395_v4, %v486_v14  ;;  %v514_v13 = vpack.c.bf16 %v468_v15, %v468_v15 }
 0x33c   :  { %v453_v21 = vpop.xlane.xlu0 %452  ;;  %v477_v24 = vsel %vm476_vm1, %v1393_v61, %v473_v11  ;;  %v488_v29 = vadd.f32 %v1395_v4, %v487_v26  ;;  %1297 = vmatmul.msk.bf16.vlgmr.msrb.gmra.mxu3 %vm523_vm3, %v514_v13  ;;  %vm929_vm1 = vcmask 1041409  }
 0x33d   :  { %1396 = vrcp.f32 %v453_v21  ;;  %v482_v28 = vsel %vm479_vm2, %v481_v18, %v477_v24  ;;  %v510_v47 = vand.u32 2147483648, %v453_v21  ;;  %vm504_vm13 = vweird.f32 %v453_v21 }
 0x33e   :  { %v483_v31 = vmul.f32 %v1727_v17, %v482_v28  ;;  %v492_v30 = vsel %vm491_vm10, %v1395_v4, %v488_v29  ;;  %v508_v17 = vand.u32 2147483647, %v453_v21  ;;  %vm932_vm2 = vcmask 1042434  }
 0x33f   :  { %v497_v39 = vsel %vm494_vm11, %v496_v35, %v492_v30  ;;  %v511_v55 = vor.u32 1.1754944e-38, %v510_v47 }
 0x340   :  { %v515_v36 = vpack.c.bf16 %v483_v31, %v483_v31  ;;  %v498_v33 = vmul.f32 %v1731_v38, %v497_v39  ;;  %vm509_vm15 = vcmp.eq.f32.partialorder %v508_v17, 8.507059e+37 }
 0x342   :  { %1298 = vmatmul.msk.bf16.vlgmr.msrb.gmra.mxu0 %vm523_vm3, %v515_v36  ;;  %v516_v44 = vpack.c.bf16 %v498_v33, %v498_v33 }
 0x343   :  { %v1397_v40 = vpop.eup %1396 }
 0x344   :  { %v500_v41 = vmul.f32 %v1397_v40, %v453_v21  ;;  %1299 = vmatmul.msk.bf16.vlgmr.msra.gmra.mxu1 %vm523_vm3, %v516_v44  ;;  %vm505_vm12 = vweird.f32 %v1397_v40 }
 0x345   :  { %vm506_vm14 = vmor %vm504_vm13, %vm505_vm12 }
 0x346   :  { %v501_v45 = vsub.f32 1.0, %v500_v41  ;;  %v678_v43 = vpop.permute.xlu1 %677 }
 0x347   :  { %v683_v51 = vsel %vm332_vm7, %v678_v43, 0 }
 0x348   :  { %v502_v48 = vmul.f32 %v1397_v40, %v501_v45  ;;  %692 = vmatpush.bf16.xpose.msrb.mxu1 %v683_v51 }
 0x34a   :  { %v503_v49 = vadd.f32 %v1397_v40, %v502_v48 }
 0x34c   :  { %v507_v38 = vsel %vm506_vm14, %v1397_v40, %v503_v49  ;;  %1301 = vmatmul.msk.bf16.vlgmr.msra.gmra.mxu3 %vm332_vm7, %v1748_v52 }
 0x34d   :  { %v512_v22 = vsel %vm509_vm15, %v511_v55, %v507_v38 }
 0x34e   :  { %v513_v57 = vmul.f32 %v1736_v46, %v512_v22 }
 0x34f   :  { %v652_v58 = vpop.permute.xlu0 %651 }
 0x350   :  { %v657_v59 = vsel %vm332_vm7, %v652_v58, 0  ;;  %v517_v61 = vpack.c.bf16 %v513_v57, %v513_v57 }
 0x351   :  { %666 = vmatpush.bf16.xpose.msra.mxu0 %v657_v59 }
 0x352   :  { %1300 = vmatmul.msk.bf16.vlgmr.msra.gmra.mxu2 %vm523_vm3, %v517_v61 }
 0x357   :  { %v676_v0 = vpop.permute.xlu0 %675 }
 0x358   :  { %1302 = vmatmul.msk.bf16.vlgmr.msra.gmra.mxu0 %vm332_vm7, %v650_v62  ;;  %1303 = vmatmul.msk.bf16.vlgmr.msrb.gmra.mxu1 %vm332_vm7, %v676_v0 }
 0x362   :  { %1304 = vmatmul.msk.bf16.vlgmr.msrb.gmra.mxu2 %vm332_vm7, %v1750_v54 }
 0x3bf   :  { %v564_v46 = vpop.f32.mrf.mxu0  ;;  %v540_v34 = vpop.f32.mrf.mxu3 }
 0x3c0   :  { %v617_v1 = vpack.c.bf16 %v564_v46, %v564_v46  ;;  %v616_v52 = vpack.c.bf16 %v540_v34, %v540_v34 }
 0x3c1   :  { %v588_v42 = vpop.f32.mrf.mxu1 }
 0x3c2   :  { %v965_v2 = vunpack.c.l.b16 %v617_v1  ;;  %v964_v3 = vunpack.c.l.b16 %v616_v52  ;;  %v618_v4 = vpack.c.bf16 %v588_v42, %v588_v42 }
 0x3c4   :  { %v968_v32 = vrot.slane %v965_v2, 7  ;;  %v966_v6 = vunpack.c.l.b16 %v618_v4 }
 0x3c6   :  { %v969_v50 = vsel %vm929_vm1, %v968_v32, %v964_v3  ;;  %v970_v9 = vrot.slane %v966_v6, 6 }
 0x3c7   :  { %v566_v8 = vpop.f32.mrf.mxu0  ;;  %v542_v10 = vpop.f32.mrf.mxu3 }
 0x3c8   :  { %v971_v11 = vsel %vm932_vm2, %v970_v9, %v969_v50 }
 0x3c9   :  { %v590_v54 = vpop.f32.mrf.mxu1 }
 0x3cf   :  { %v642_v12 = vpop.f32.mrf.mxu3 }
 0x3d0   :  { %v724_v14 = vmul.f32 0.25, %v642_v12 }
 0x3d2   :  { %v728_v15 = vadd.f32 %v724_v14, %v1702_v53 }
 0x3d4   :  { %v732_v26 = vsel %vm417_vm9, %v728_v15, -inf }
 0x3d5   :  { %v612_v18 = vpop.f32.mrf.mxu2  ;;  %v668_v19 = vpop.f32.mrf.mxu0  ;;  %733 = vmax.xlane.f32.xlu1 %v732_v26 }
 0x3d6   :  { %v619_v20 = vpack.c.bf16 %v612_v18, %v612_v18  ;;  %v725_v21 = vmul.f32 0.25, %v668_v19  ;;  %v694_v24 = vpop.f32.mrf.mxu1 }
 0x3d7   :  { %v726_v13 = vmul.f32 0.25, %v694_v24  ;;  %v644_v30 = vpop.f32.mrf.mxu3  ;;  %v1347_v24 = vld [vmem:[%s1912_s6] sm:$0xff] }
 0x3d8   :  { %v967_v28 = vunpack.c.l.b16 %v619_v20  ;;  %v729_v29 = vadd.f32 %v725_v21, %v314_v56 }
 0x3d9   :  { %v730_v31 = vadd.f32 %v726_v13, %v315_v60 }
 0x3da   :  { %v972_v35 = vrot.slane %v967_v28, 5  ;;  %v735_v36 = vsel %vm417_vm9, %v729_v29, -inf }
 0x3db   :  { %736 = vmax.xlane.f32.xlu0 %v735_v36  ;;  %v738_v40 = vsel %vm417_vm9, %v730_v31, -inf }
 0x3dc   :  { %v1778_v39 = vsel %vm935_vm5, %v972_v35, %v971_v11 }
 0x3dd   :  { %v614_v33 = vpop.f32.mrf.mxu2  ;;  %v670_v41 = vpop.f32.mrf.mxu0  ;;  %739 = vmax.xlane.f32.xlu1 %v738_v40 }
 0x3de   :  { %v696_v44 = vpop.f32.mrf.mxu1 }
 0x3e5   :  { %v720_v45 = vpop.f32.mrf.mxu2 }
 0x3e6   :  { %v727_v56 = vmul.f32 0.25, %v720_v45 }
 0x3e8   :  { %v731_v47 = vadd.f32 %v727_v56, %v316_v5 }
 0x3ea   :  { %v741_v60 = vsel %vm417_vm9, %v731_v47, -inf }
 0x3eb   :  { %742 = vmax.xlane.f32.xlu2 %v741_v60 }
 0x3ed   :  { %v722_v48 = vpop.f32.mrf.mxu2 }
 0x3ef   :  { %832 = vrot.lane.b32.xlu0 %v1659_v7, %s1451_s2 }
 0x448   :  { %v734_v17 = vpop.xlane.xlu1 %733 }
 0x449   :  { %v744_v22 = vsub.f32 %v728_v15, %v734_v17 }
 0x44b   :  { %v748_v5 = vmul.f32 1.442695, %v744_v22 }
 0x44e   :  { %v737_v43 = vpop.xlane.xlu0 %736 }
 0x44f   :  { %v745_v49 = vsub.f32 %v729_v29, %v737_v43 }
 0x450   :  { %v740_v55 = vpop.xlane.xlu1 %739 }
 0x451   :  { %v750_v51 = vmul.f32 1.442695, %v745_v49  ;;  %v746_v38 = vsub.f32 %v730_v31, %v740_v55 }
 0x453   :  { %1398 = vpow2.f32 %v750_v51  ;;  %v752_v57 = vmul.f32 1.442695, %v746_v38 }
 0x455   :  { %1400 = vpow2.f32 %v752_v57 }
 0x456   :  { %1402 = vpow2.f32 %v748_v5 }
 0x459   :  { %v1399_v53 = vpop.eup %1398 }
 0x45a   :  { %v759_v58 = vsel %vm417_vm9, %v1399_v53, 0.0 }
 0x45b   :  { %760 = vadd.xlane.f32.xlu1 %v759_v58  ;;  %v1787_v59 = vpop.eup %1400 }
 0x45c   :  { %v762_v7 = vsel %vm417_vm9, %v1787_v59, 0.0  ;;  %v1792_v34 = vpop.eup %1402 }
 0x45d   :  { %763 = vadd.xlane.f32.xlu2 %v762_v7  ;;  %v756_v52 = vsel %vm417_vm9, %v1792_v34, 0.0 }
 0x45e   :  { %v743_v61 = vpop.xlane.xlu2 %742 }
 0x45f   :  { %v747_v62 = vsub.f32 %v731_v47, %v743_v61 }
 0x461   :  { %v754_v0 = vmul.f32 1.442695, %v747_v62  ;;  %v833_v46 = vpop.permute.xlu0 %832 }
 0x462   :  { %v838_v1 = vsel %vm527_vm8, %v833_v46, 0 }
 0x463   :  { %1404 = vpow2.f32 %v754_v0  ;;  %847 = vmatpush.bf16.msrb.mxu3 %v838_v1 }
 0x465   :  { %757 = vadd.xlane.f32.xlu2 %v756_v52 }
 0x469   :  { %v1796_v2 = vpop.eup %1404 }
 0x46a   :  { %v765_v42 = vsel %vm417_vm9, %v1796_v2, 0.0 }
 0x46b   :  { %766 = vadd.xlane.f32.xlu0 %v765_v42 }
 0x474   :  { %895 = vrot.lane.b32.xlu1 %v1689_v37, %s1451_s2 }
 0x47d   :  { %853 = vrot.lane.b32.xlu2 %v1667_v16, %s1451_s2 }
 0x47f   :  { %874 = vrot.lane.b32.xlu0 %v1680_v27, %s1451_s2 }
 0x4ce   :  { %v761_v3 = vpop.xlane.xlu1 %760 }
 0x4cf   :  { %1406 = vrcp.f32 %v761_v3  ;;  %v794_v8 = vand.u32 2147483648, %v761_v3  ;;  %v792_v37 = vand.u32 2147483647, %v761_v3  ;;  %vm788_vm6 = vweird.f32 %v761_v3 }
 0x4d0   :  { %v1806_v32 = vpop.xlane.xlu2 %763 }
 0x4d1   :  { %1408 = vrcp.f32 %v1806_v32  ;;  %v795_v54 = vor.u32 1.1754944e-38, %v794_v8  ;;  %vm793_vm11 = vcmp.eq.f32.partialorder %v792_v37, 8.507059e+37  ;;  %v809_v40 = vand.u32 2147483648, %v1806_v32 }
 0x4d2   :  { %vm803_vm14 = vweird.f32 %v1806_v32  ;;  %v807_v47 = vand.u32 2147483647, %v1806_v32 }
 0x4d3   :  { %v810_v22 = vor.u32 1.1754944e-38, %v809_v40 }
 0x4d4   :  { %vm808_vm0 = vcmp.eq.f32.partialorder %v807_v47, 8.507059e+37 }
 0x4d5   :  { %v1407_v4 = vpop.eup %1406 }
 0x4d6   :  { %v784_v50 = vmul.f32 %v1407_v4, %v761_v3  ;;  %vm789_vm9 = vweird.f32 %v1407_v4 }
 0x4d7   :  { %v1809_v9 = vpop.eup %1408  ;;  %vm790_vm10 = vmor %vm788_vm6, %vm789_vm9 }
 0x4d8   :  { %v785_v6 = vsub.f32 1.0, %v784_v50  ;;  %v799_v27 = vmul.f32 %v1809_v9, %v1806_v32  ;;  %v758_v11 = vpop.xlane.xlu2 %757  ;;  %vm804_vm12 = vweird.f32 %v1809_v9 }
 0x4d9   :  { %1410 = vrcp.f32 %v758_v11  ;;  %v779_v30 = vand.u32 2147483648, %v758_v11  ;;  %v777_v45 = vand.u32 2147483647, %v758_v11  ;;  %vm1825_vm15 = vmor %vm803_vm14, %vm804_vm12  ;;  %vm773_vm9 = vweird.f32 %v758_v11 }
 0x4da   :  { %v786_v10 = vmul.f32 %v1407_v4, %v785_v6  ;;  %v800_v14 = vsub.f32 1.0, %v799_v27 }
 0x4db   :  { %v780_v43 = vor.u32 1.1754944e-38, %v779_v30 }
 0x4dc   :  { %v787_v16 = vadd.f32 %v1407_v4, %v786_v10  ;;  %v801_v21 = vmul.f32 %v1809_v9, %v800_v14 }
 0x4de   :  { %v791_v12 = vsel %vm790_vm10, %v1407_v4, %v787_v16  ;;  %v767_v15 = vpop.xlane.xlu0 %766  ;;  %v802_v36 = vadd.f32 %v1809_v9, %v801_v21  ;;  %v974_v4 = vpack.c.b16 %v1778_v39, %v1778_v39 }
 0x4df   :  { %v796_v18 = vsel %vm793_vm11, %v795_v54, %v791_v12  ;;  %1412 = vrcp.f32 %v767_v15  ;;  %v1411_v20 = vpop.eup %1410  ;;  %v824_v49 = vand.u32 2147483648, %v767_v15  ;;  %v822_v38 = vand.u32 2147483647, %v767_v15 }
 0x4e0   :  { %v797_v19 = vmul.f32 %v1399_v53, %v796_v18  ;;  %v769_v26 = vmul.f32 %v1411_v20, %v758_v11  ;;  %v854_v13 = vpop.permute.xlu2 %853  ;;  %vm774_vm13 = vweird.f32 %v1411_v20  ;;  %v806_v51 = vsel %vm1825_vm15, %v1809_v9, %v802_v36 }
 0x4e1   :  { %v859_v28 = vsel %vm527_vm8, %v854_v13, 0  ;;  %vm775_vm6 = vmor %vm773_vm9, %vm774_vm13  ;;  %vm778_vm11 = vcmp.eq.f32.partialorder %v777_v45, 8.507059e+37  ;;  %vm818_vm12 = vweird.f32 %v767_v15  ;;  %v811_v58 = vsel %vm808_vm0, %v810_v22, %v806_v51 }
 0x4e2   :  { %v829_v29 = vpack.c.bf16 %v797_v19, %v797_v19  ;;  %v770_v35 = vsub.f32 1.0, %v769_v26  ;;  %868 = vmatpush.bf16.msrb.mxu0 %v859_v28  ;;  %v825_v7 = vor.u32 1.1754944e-38, %v824_v49  ;;  %vm823_vm4 = vcmp.eq.f32.partialorder %v822_v38, 8.507059e+37 }
 0x4e3   :  { %v812_v1 = vmul.f32 %v1787_v59, %v811_v58  ;;  %v1348_v59 = vld [vmem:[%s1912_s6 + $0x8] sm:$0xff]  ;;  %vm1924_vm0 = vcmask 257024  }
 0x4e4   :  { %v771_v44 = vmul.f32 %v1411_v20, %v770_v35  ;;  %954 = vmatpush.bf16.msra.mxu3 %v1348_v59  ;;  %v997_v35 = vperm.slane %v1629_v23, 2  ;;  %v1350_v23 = vld [vmem:[%s1913_s7 + $0x8] sm:$0xff]  ;;  %vm1927_vm13 = vmmov %vm1924_vm0 }
 0x4e5   :  { %v1413_v31 = vpop.eup %1412  ;;  %1306 = vmatmul.msk.bf16.vlgmr.msrb.gmra.mxu0 %vm523_vm3, %v829_v29  ;;  %vm1928_vm15 = vmmov %vm1924_vm0 }
 0x4e6   :  { %v814_v33 = vmul.f32 %v1413_v31, %v767_v15  ;;  %v896_v41 = vpop.permute.xlu1 %895  ;;  %991 = vmatpush.bf16.msra.mxu0 %v1347_v24  ;;  %v772_v17 = vadd.f32 %v1411_v20, %v771_v44  ;;  %vm819_vm10 = vweird.f32 %v1413_v31 }
 0x4e7   :  { %v901_v56 = vsel %vm527_vm8, %v896_v41, 0  ;;  %vm820_vm14 = vmor %vm818_vm12, %vm819_vm10  ;;  %vm1154_vm12 = vcmask 254976  }
 0x4e8   :  { %v815_v60 = vsub.f32 1.0, %v814_v33  ;;  %910 = vmatpush.bf16.msra.mxu2 %v901_v56  ;;  %v776_v57 = vsel %vm775_vm6, %v1411_v20, %v772_v17 }
 0x4e9   :  { %v781_v53 = vsel %vm778_vm11, %v780_v43, %v776_v57  ;;  %vm1174_vm11 = vcmask 257026  }
 0x4ea   :  { %v816_v55 = vmul.f32 %v1413_v31, %v815_v60  ;;  %v782_v61 = vmul.f32 %v1792_v34, %v781_v53  ;;  %v830_v34 = vpack.c.bf16 %v812_v1, %v812_v1 }
 0x4ec   :  { %v817_v5 = vadd.f32 %v1413_v31, %v816_v55  ;;  %v828_v46 = vpack.c.bf16 %v782_v61, %v782_v61 }
 0x4ee   :  { %v821_v62 = vsel %vm820_vm14, %v1413_v31, %v817_v5  ;;  %1305 = vmatmul.msk.bf16.vlgmr.msrb.gmra.mxu3 %vm523_vm3, %v828_v46  ;;  %v1864_v5 = vld [vmem:[%s1916_s10] sm:$0xff] }
 0x4ef   :  { %v826_v0 = vsel %vm823_vm4, %v825_v7, %v821_v62  ;;  %vm1925_vm4 = vmmov %vm1924_vm0  ;;  %v1022_v58 = vperm.slane %v1864_v5, 3  ;;  %v1024_v7 = vperm.slane %v1864_v5, 4 }
 0x4f0   :  { %v827_v52 = vmul.f32 %v1796_v2, %v826_v0 }
 0x4f1   :  { %v875_v42 = vpop.permute.xlu0 %874 }
 0x4f2   :  { %v880_v3 = vsel %vm527_vm8, %v875_v42, 0  ;;  %v831_v32 = vpack.c.bf16 %v827_v52, %v827_v52  ;;  %v1354_v52 = vld [vmem:[%s1915_s9 + $0x18] sm:$0xff]  ;;  %v1353_v42 = vld [vmem:[%s1915_s9 + $0x10] sm:$0xff] }
 0x4f3   :  { %889 = vmatpush.bf16.msra.mxu1 %v880_v3  ;;  %1114 = vmatpush.bf16.msrb.mxu2 %v1354_v52  ;;  %v1352_v3 = vld [vmem:[%s1915_s9 + $0x8] sm:$0xff] }
 0x4f4   :  { %1308 = vmatmul.msk.bf16.vlgmr.msra.gmra.mxu2 %vm523_vm3, %v831_v32  ;;  %v1351_v32 = vld [vmem:[%s1915_s9] sm:$0xff] }
 0x4f5   :  { %1318 = vmatmul.msk.bf16.vlgmr.msra.gmra.mxu0 %vm332_vm7, %v974_v4 }
 0x4f6   :  { %1307 = vmatmul.msk.bf16.vlgmr.msra.gmra.mxu1 %vm523_vm3, %v830_v34  ;;  %v1369_v34 = vld [vmem:[%s1914_s8] ss:$0 sm:$0xff] }
 0x4f7   :  { %1056 = vmatpush.bf16.msrb.mxu1 %v1350_v23  ;;  %1115 = vmatpush.bf16.msrb.mxu2 %v1353_v42 }
 0x4fb   :  { %1116 = vmatpush.bf16.msrb.mxu2 %v1352_v3 }
 0x4ff   :  { %1117 = vmatpush.bf16.msrb.mxu2 %v1351_v32 }
 0x562   :  { %v870_v2 = vpop.f32.mrf.mxu0 }
 0x563   :  { %v917_v6 = vpack.c.bf16 %v870_v2, %v870_v2 }
 0x565   :  { %v925_v11 = vunpack.c.l.b16 %v917_v6 }
 0x567   :  { %v928_v15 = vrot.slane %v925_v11, 7 }
 0x56a   :  { %v872_v50 = vpop.f32.mrf.mxu0 }
 0x571   :  { %v849_v9 = vpop.f32.mrf.mxu3 }
 0x572   :  { %v916_v37 = vpack.c.bf16 %v849_v9, %v849_v9  ;;  %v993_v27 = vpop.f32.mrf.mxu0 }
 0x573   :  { %v891_v8 = vpop.f32.mrf.mxu1 }
 0x574   :  { %v918_v10 = vpack.c.bf16 %v891_v8, %v891_v8  ;;  %v924_v54 = vunpack.c.l.b16 %v916_v37 }
 0x576   :  { %v926_v16 = vunpack.c.l.b16 %v918_v10  ;;  %v930_v20 = vsel %vm929_vm1, %v928_v15, %v924_v54  ;;  %v1081_v54 = vperm.slane %v1864_v5, 5 }
 0x577   :  { %v912_v39 = vpop.f32.mrf.mxu2 }
 0x578   :  { %v919_v12 = vpack.c.bf16 %v912_v39, %v912_v39  ;;  %v931_v14 = vrot.slane %v926_v16, 6 }
 0x579   :  { %v851_v24 = vpop.f32.mrf.mxu3 }
 0x57a   :  { %v927_v18 = vunpack.c.l.b16 %v919_v12  ;;  %v933_v26 = vsel %vm932_vm2, %v931_v14, %v930_v20  ;;  %v995_v13 = vpop.f32.mrf.mxu0  ;;  %vm1926_vm2 = vcmask 261120  }
 0x57b   :  { %v893_v19 = vpop.f32.mrf.mxu1 }
 0x57c   :  { %v934_v21 = vrot.slane %v927_v18, 5 }
 0x57e   :  { %v936_v28 = vsel %vm935_vm5, %v934_v21, %v933_v26  ;;  %vm1106_vm5 = vcmask 523264  }
 0x57f   :  { %v937_v29 = vpack.c.b16 %v936_v28, %v936_v28  ;;  %v914_v31 = vpop.f32.mrf.mxu2 }
 0x581   :  { %1313 = vmatmul.msk.bf16.vlgmr.msra.gmra.mxu3 %vm332_vm7, %v937_v29 }
 0x604   :  { %v956_v30 = vpop.f32.mrf.mxu3 }
 0x605   :  { %v994_v36 = vadd.f32 %v993_v27, %v956_v30 }
 0x607   :  { %v998_v40 = vadd.f32 %v997_v35, %v994_v36 }
 0x609   :  { %v999_v33 = vadd.f32 %v998_v40, %v1652_v63  ;;  %v1349_v63 = vld [vmem:[%s1913_s7] sm:$0xff] }
 0x60a   :  { %1057 = vmatpush.bf16.msrb.mxu1 %v1349_v63 }
 0x60b   :  { %v1000_v41 = vsel %vm1924_vm0, %v999_v33, 0.0 }
 0x60c   :  { %1001 = vadd.xlane.f32.xlu1 %v1000_v41  ;;  %v958_v44 = vpop.f32.mrf.mxu3 }
 0x60d   :  { %v1146_v44 = vperm.slane %v1864_v5, 6 }
 0x67f   :  { %v1002_v45 = vpop.xlane.xlu1 %1001 }
 0x680   :  { %v1003_v56 = vmul.f32 %v1002_v45, %v1558_v25 }
 0x682   :  { %v1004_v47 = vsub.f32 %v999_v33, %v1003_v56 }
 0x684   :  { %v1005_v60 = vmul.f32 %v1004_v47, %v1004_v47 }
 0x686   :  { %v1006_v48 = vsel %vm1925_vm4, %v1005_v60, 0.0 }
 0x687   :  { %1007 = vadd.xlane.f32.xlu0 %v1006_v48 }
 0x6fa   :  { %v1008_v17 = vpop.xlane.xlu0 %1007 }
 0x6fb   :  { %v1009_v43 = vmul.f32 %v1008_v17, %v1558_v25 }
 0x6fd   :  { %v1010_v49 = vadd.f32 1e-12, %v1009_v43 }
 0x6ff   :  { %1414 = vrsqrt.f32 %v1010_v49  ;;  %vm1017_vm3 = vweird.f32 %v1010_v49 }
 0x705   :  { %v1415_v51 = vpop.eup %1414 }
 0x706   :  { %v1012_v55 = vmul.f32 %v1415_v51, %v1010_v49  ;;  %vm1018_vm7 = vweird.f32 %v1415_v51 }
 0x707   :  { %vm1019_vm1 = vmor %vm1017_vm3, %vm1018_vm7 }
 0x708   :  { %v1013_v38 = vmul.f32 %v1415_v51, %v1012_v55 }
 0x70a   :  { %v1014_v22 = vmul.f32 0.5, %v1013_v38 }
 0x70c   :  { %v1015_v57 = vsub.f32 1.5, %v1014_v22 }
 0x70e   :  { %v1016_v53 = vmul.f32 %v1415_v51, %v1015_v57 }
 0x710   :  { %v1020_v61 = vsel %vm1019_vm1, %v1415_v51, %v1016_v53 }
 0x711   :  { %v1021_v62 = vmul.f32 %v1020_v61, %v1004_v47  ;;  %v1148_v47 = vperm.slane %v1864_v5, 7 }
 0x713   :  { %v1023_v0 = vmul.f32 %v1022_v58, %v1021_v62 }
 0x715   :  { %v1025_v46 = vadd.f32 %v1024_v7, %v1023_v0 }
 0x717   :  { %v1026_v1 = vpack.c.bf16 %v1025_v46, %v1025_v46 }
 0x719   :  { %1327 = vmatmul.msk.bf16.vlgmr.msrb.gmra.mxu1 %vm1926_vm2, %v1026_v1 }
 0x796   :  { %v1059_v4 = vpop.f32.mrf.mxu1 }
 0x797   :  { %v1060_v59 = vadd.f32 %v1369_v34, %v1059_v4 }
 0x799   :  { %v1063_v2 = vmul.f32 %v1060_v59, %v1060_v59 }
 0x79b   :  { %v1064_v50 = vmul.f32 %v1063_v2, %v1060_v59  ;;  %v1452_v2 = vmov 0  }
 0x79c   :  { %1366 = vset.pattern.permute.xlu2 %v1452_v2  ;;  %1367 = vset.pattern.permute.xlu0 %v1452_v2 }
 0x79d   :  { %v1065_v6 = vmul.f32 0.044715, %v1064_v50 }
 0x79e   :  { %v1061_v8 = vpop.f32.mrf.mxu1 }
 0x79f   :  { %v1066_v9 = vadd.f32 %v1065_v6, %v1060_v59 }
 0x7a1   :  { %v1067_v10 = vmul.f32 0.7978846, %v1066_v9 }
 0x7a3   :  { %1416 = vtanh.f32 %v1067_v10 }
 0x7a9   :  { %v1417_v37 = vpop.eup %1416 }
 0x7aa   :  { %v1069_v27 = vadd.f32 1.0, %v1417_v37 }
 0x7ac   :  { %v1070_v11 = vmul.f32 0.5, %v1069_v27 }
 0x7ae   :  { %v1071_v16 = vmul.f32 %v1070_v11, %v1060_v59 }
 0x7b0   :  { %v1072_v39 = vpack.c.bf16 %v1071_v16, %v1071_v16 }
 0x7b2   :  { %1344 = vmatmul.msk.bf16.vlgmr.msrb.gmra.mxu2 %vm1106_vm5, %v1072_v39 }
 0x835   :  { %v1119_v12 = vpop.f32.mrf.mxu2 }
 0x836   :  { %v1120_v14 = vadd.f32 %v1119_v12, %v1081_v54 }
 0x838   :  { %v1123_v15 = vadd.f32 %v1120_v14, %v1025_v46 }
 0x83a   :  { %v1124_v18 = vsel %vm1927_vm13, %v1123_v15, 0.0  ;;  %vm1225_vm13 = vcmask 1024  }
 0x83b   :  { %1125 = vadd.xlane.f32.xlu2 %v1124_v18 }
 0x83d   :  { %v1121_v19 = vpop.f32.mrf.mxu2 }
 0x8ae   :  { %v1126_v20 = vpop.xlane.xlu2 %1125 }
 0x8af   :  { %v1127_v21 = vmul.f32 %v1126_v20, %v1558_v25 }
 0x8b1   :  { %v1128_v24 = vsub.f32 %v1123_v15, %v1127_v21 }
 0x8b3   :  { %v1129_v26 = vmul.f32 %v1128_v24, %v1128_v24 }
 0x8b5   :  { %v1130_v13 = vsel %vm1928_vm15, %v1129_v26, 0.0 }
 0x8b6   :  { %1131 = vadd.xlane.f32.xlu1 %v1130_v13 }
 0x929   :  { %v1132_v28 = vpop.xlane.xlu1 %1131 }
 0x92a   :  { %v1133_v29 = vmul.f32 %v1132_v28, %v1558_v25 }
 0x92c   :  { %v1134_v31 = vadd.f32 1e-12, %v1133_v29  ;;  %v1213_v29 = vld [vmem:[%s1909_s3] sm:$0x3] }
 0x92e   :  { %1418 = vrsqrt.f32 %v1134_v31  ;;  %vm1141_vm6 = vweird.f32 %v1134_v31 }
 0x934   :  { %v1419_v35 = vpop.eup %1418 }
 0x935   :  { %v1136_v30 = vmul.f32 %v1419_v35, %v1134_v31  ;;  %vm1142_vm9 = vweird.f32 %v1419_v35 }
 0x936   :  { %vm1143_vm10 = vmor %vm1141_vm6, %vm1142_vm9  ;;  %vm1255_vm9 = vcmask 1045504   ;;  %vm1929_vm6 = vcmask 261120  }
 0x937   :  { %v1137_v36 = vmul.f32 %v1419_v35, %v1136_v30  ;;  %v1218_v30 = vsub.f32 1.0, %v1213_v29 }
 0x939   :  { %v1138_v40 = vmul.f32 0.5, %v1137_v36 }
 0x93b   :  { %v1139_v33 = vsub.f32 1.5, %v1138_v40 }
 0x93d   :  { %v1140_v41 = vmul.f32 %v1419_v35, %v1139_v33 }
 0x93f   :  { %v1144_v45 = vsel %vm1143_vm10, %v1419_v35, %v1140_v41  ;;  %vm1257_vm10 = vcmask 1046528  }
 0x940   :  { %v1145_v56 = vmul.f32 %v1144_v45, %v1128_v24 }
 0x942   :  { %v1147_v60 = vmul.f32 %v1146_v44, %v1145_v56  ;;  %v1453_v56 = vmov 2.0  }
 0x944   :  { %v1891_v48 = vadd.f32 %v1148_v47, %v1147_v60 }
 0x946   :  { %v1158_v25 = vmul.f32 %v1891_v48, %v1891_v48  ;;  %v1151_v23 = vrot.slane %v1891_v48, 2 }
 0x948   :  { %v1175_v63 = vsel %vm1174_vm11, %v1158_v25, 0.0  ;;  %v1159_v17 = vsel %vm1154_vm12, %v1158_v25, 0.0  ;;  %v1153_v43 = vmul.f32 %v1151_v23, %v1891_v48 }
 0x949   :  { %1176 = vadd.xlane.f32.xlu0 %v1175_v63  ;;  %1160 = vadd.xlane.f32.xlu2 %v1159_v17 }
 0x94a   :  { %v1155_v49 = vsel %vm1154_vm12, %v1153_v43, 0.0 }
 0x94b   :  { %1156 = vadd.xlane.f32.xlu1 %v1155_v49 }
 0x9bc   :  { %v1177_v51 = vpop.xlane.xlu0 %1176  ;;  %v1161_v55 = vpop.xlane.xlu2 %1160 }
 0x9bd   :  { %1420 = vrsqrt.f32 %v1177_v51  ;;  %vm1185_vm14 = vcmp.eq.f32.partialorder %v1177_v51, inf  ;;  %vm1187_vm0 = vcmp.eq.f32.partialorder %v1177_v51, 0.0  ;;  %v1188_v42 = vand.u32 2147483648, %v1177_v51 }
 0x9be   :  { %1422 = vrsqrt.f32 %v1161_v55  ;;  %vm1169_vm4 = vcmp.eq.f32.partialorder %v1161_v55, inf  ;;  %v1172_v34 = vand.u32 2147483648, %v1161_v55  ;;  %vm1171_vm7 = vcmp.eq.f32.partialorder %v1161_v55, 0.0  ;;  %v1157_v12 = vpop.xlane.xlu1 %1156 }
 0x9bf   :  { %v1190_v19 = vmul.f32 0.5, %v1157_v12 }
 0x9c3   :  { %v1421_v38 = vpop.eup %1420 }
 0x9c4   :  { %v1423_v22 = vpop.eup %1422  ;;  %v1179_v57 = vmul.f32 %v1421_v38, %v1177_v51 }
 0x9c5   :  { %v1163_v53 = vmul.f32 %v1423_v22, %v1161_v55 }
 0x9c6   :  { %v1180_v5 = vmul.f32 %v1421_v38, %v1179_v57 }
 0x9c7   :  { %v1164_v58 = vmul.f32 %v1423_v22, %v1163_v53 }
 0x9c8   :  { %v1181_v61 = vmul.f32 0.5, %v1180_v5 }
 0x9c9   :  { %v1165_v7 = vmul.f32 0.5, %v1164_v58  ;;  %v1246_v58 = vsel %vm1929_vm6, %v1891_v48, 0.0 }
 0x9ca   :  { %v1182_v62 = vsub.f32 1.5, %v1181_v61 }
 0x9cb   :  { %v1166_v0 = vsub.f32 1.5, %v1165_v7 }
 0x9cc   :  { %v1183_v46 = vmul.f32 %v1421_v38, %v1182_v62 }
 0x9cd   :  { %v1167_v1 = vmul.f32 %v1423_v22, %v1166_v0 }
 0x9ce   :  { %v1184_v52 = vmul.f32 %v1183_v46, %v1177_v51 }
 0x9cf   :  { %v1168_v3 = vmul.f32 %v1167_v1, %v1161_v55 }
 0x9d0   :  { %v1186_v32 = vsel %vm1185_vm14, %v1177_v51, %v1184_v52 }
 0x9d1   :  { %v1189_v4 = vsel %vm1187_vm0, %v1188_v42, %v1186_v32  ;;  %v1170_v59 = vsel %vm1169_vm4, %v1161_v55, %v1168_v3 }
 0x9d2   :  { %v1192_v50 = vmax.f32 %v1189_v4, 1e-08  ;;  %v1173_v6 = vsel %vm1171_vm7, %v1172_v34, %v1170_v59 }
 0x9d3   :  { %v1191_v9 = vmax.f32 %v1173_v6, 1e-08 }
 0x9d4   :  { %v1194_v8 = vrot.slane %v1192_v50, 2 }
 0x9d6   :  { %v1196_v10 = vmul.f32 %v1194_v8, %v1191_v9 }
 0x9d8   :  { %1424 = vrcp.f32 %v1196_v10  ;;  %v1208_v16 = vand.u32 2147483648, %v1196_v10  ;;  %v1206_v54 = vand.u32 2147483647, %v1196_v10  ;;  %vm1202_vm1 = vweird.f32 %v1196_v10 }
 0x9da   :  { %v1209_v15 = vor.u32 1.1754944e-38, %v1208_v16  ;;  %vm1207_vm5 = vcmp.eq.f32.partialorder %v1206_v54, 8.507059e+37 }
 0x9de   :  { %v1425_v37 = vpop.eup %1424 }
 0x9df   :  { %v1198_v27 = vmul.f32 %v1425_v37, %v1196_v10  ;;  %vm1203_vm3 = vweird.f32 %v1425_v37 }
 0x9e0   :  { %vm1204_vm2 = vmor %vm1202_vm1, %vm1203_vm3 }
 0x9e1   :  { %v1199_v11 = vsub.f32 1.0, %v1198_v27 }
 0x9e3   :  { %v1200_v39 = vmul.f32 %v1425_v37, %v1199_v11 }
 0x9e5   :  { %v1201_v14 = vadd.f32 %v1425_v37, %v1200_v39 }
 0x9e7   :  { %v1205_v18 = vsel %vm1204_vm2, %v1425_v37, %v1201_v14 }
 0x9e8   :  { %v1210_v20 = vsel %vm1207_vm5, %v1209_v15, %v1205_v18 }
 0x9e9   :  { %v1211_v21 = vmul.f32 %v1210_v20, %v1190_v19 }
 0x9eb   :  { %v1212_v24 = vadd.f32 0.5, %v1211_v21 }
 0x9ed   :  { %v1214_v26 = vadd.f32 1e-06, %v1212_v24  ;;  %v1219_v13 = vsub.f32 1.0, %v1212_v24  ;;  %1249 = vperm.xlu2 %1366, %v1212_v24  }
 0x9ef   :  { %1426 = vlog2.f32 %v1214_v26  ;;  %v1220_v28 = vadd.f32 1e-06, %v1219_v13 }
 0x9f1   :  { %1428 = vlog2.f32 %v1220_v28 }
 0x9f2   :  { %1430 = vrcp.f32 %v1453_v56 }
 0x9f5   :  { %v1427_v31 = vpop.eup %1426 }
 0x9f6   :  { %v1216_v35 = vmul.f32 0.6931472, %v1427_v31 }
 0x9f7   :  { %v1429_v36 = vpop.eup %1428 }
 0x9f8   :  { %v1222_v40 = vmul.f32 0.6931472, %v1429_v36  ;;  %v1217_v33 = vmul.f32 %v1216_v35, %v1213_v29  ;;  %v1431_v47 = vpop.eup %1430 }
 0x9f9   :  { %v1238_v60 = vmul.f32 2.0, %v1431_v47  ;;  %vm1242_vm15 = vweird.f32 %v1431_v47 }
 0x9fa   :  { %v1223_v41 = vmul.f32 %v1222_v40, %v1218_v30 }
 0x9fb   :  { %v1239_v25 = vsub.f32 1.0, %v1238_v60 }
 0x9fc   :  { %v1224_v44 = vadd.f32 %v1223_v41, %v1217_v33 }
 0x9fd   :  { %v1240_v43 = vmul.f32 %v1431_v47, %v1239_v25 }
 0x9fe   :  { %v1226_v45 = vsel %vm1225_vm13, %v1224_v44, 0.0 }
 0x9ff   :  { %1227 = vadd.xlane.f32.xlu0 %v1226_v45  ;;  %v1241_v55 = vadd.f32 %v1431_v47, %v1240_v43 }
 0xa01   :  { %v1243_v57 = vsel %vm1242_vm15, %v1431_v47, %v1241_v55 }
 0xa47   :  { %v1250_v53 = vpop.permute.xlu2 %1249 }
 0xa48   :  { %v1252_v5 = vrot.slane %v1250_v53, 4 }
 0xa4a   :  { %v1254_v61 = vsel %vm527_vm8, %v1246_v58, %v1252_v5 }
 0xa72   :  { %v1228_v23 = vpop.xlane.xlu0 %1227 }
 0xa73   :  { %v1229_v63 = vrot.slane %v1228_v23, 4 }
 0xa75   :  { %v1230_v17 = vadd.f32 %v1229_v63, %v1228_v23 }
 0xa77   :  { %v1231_v49 = vrot.slane %v1230_v17, 2 }
 0xa79   :  { %v1232_v51 = vadd.f32 %v1231_v49, %v1230_v17 }
 0xa7b   :  { %v1233_v38 = vrot.slane %v1232_v51, 1 }
 0xa7d   :  { %v1234_v22 = vadd.f32 %v1233_v38, %v1232_v51 }
 0xa7f   :  { %1355 = vpush %v1234_v22 }
 0xa80   :  { %1357 = vpush %v1243_v57 }
 0xab0   :  { %s1356_s3 = spop %1355 }
 0xab1   :  { %s1236_s13 = ssub.f32 0.0, %s1356_s3  ;;  %s1358_s5 = spop %1357 }
 0xab3   :  { %s1245_s14 = smul.f32 %s1358_s5, %s1236_s13 }
 0xab5   :  { %v1251_v7 = vstv %s1245_s14 }
 0xab6   :  { %v1256_v62 = vsel %vm1255_vm9, %v1254_v61, %v1251_v7 }
 0xab7   :  { %v1258_v0 = vsel %vm1257_vm10, %v1256_v62, 0.0 }
 0xab8   :  { %1259 = vst [vmem:[%s1917_s11] sm:$0xff] %v1258_v0 }
 0xab9   :  { %1264 = vsyncpa [#allocation3], 1 }

</bundles_post_ra>
